<compile_context>
chip_gen: v6e
topology: v6e:2x2x1
jax: 0.10.0
libtpu: 0.0.40
codegen_flags: <defaults>
</compile_context>

<pallas_src>
import jax
import jax.numpy as jnp
from jax.experimental import pallas as pl
from jax.experimental.pallas import tpu as pltpu


def _round_up(v, m):
    return (v + m - 1) // m * m


# ----------------------------------------------------------------------------
# Fused kernel: fc6 (staged) -> deep-K fc7 -> classifier, for one batch tile
# and one d3 tile.  Grid = (batch tiles, d3 tiles); d3 axis is a reduction.
# ----------------------------------------------------------------------------
def _jig_fused_kernel(x_ref, w6_ref, b6_ref, w7_ref, b7_ref, wc_ref, bc_ref,
                      o_ref, y_ref, acc_ref):
    """Per-grid-step shapes:
    x_ref : (9, bm, d0)  bf16     w6_ref: (d0, d1p)   bf16   b6_ref: (1, d1p) f32
    w7_ref: (9*d1p, td3) bf16     b7_ref: (1, td3)    f32
    wc_ref: (td3, d5p)   bf16     bc_ref: (1, d5p)    f32
    o_ref : (bm, d5p)    f32
    y_ref : (bm, 9*d1p)  bf16  scratch (fc6 output, persists across d3 steps)
    acc_ref:(bm, d5p)    f32   scratch (classifier accumulator over d3 tiles)
    """
    bm = x_ref.shape[1]
    d1p = w6_ref.shape[1]
    k = pl.program_id(1)

    @pl.when(k == 0)
    def _fc6_and_init():
        # fc6 + ReLU for the 9 patches of this batch tile, staged column-wise
        # into y_ref so fc7 becomes one deep-K matmul.  Each store is
        # lane-aligned (d1p is a multiple of 128) and full-height.
        b6 = jnp.broadcast_to(b6_ref[...], (bm, d1p))        # hoisted broadcast
        for r in range(9):                                   # static unroll
            z = jnp.dot(x_ref[r], w6_ref[...],
                        preferred_element_type=jnp.float32) + b6
            y_ref[:, r * d1p:(r + 1) * d1p] = jnp.maximum(z, 0.0).astype(jnp.bfloat16)
        # Classifier accumulator starts at its bias (added exactly once).
        acc_ref[...] = jnp.broadcast_to(bc_ref[...], acc_ref.shape)

    # fc7 slice: ONE matmul with K = 9*d1p (zero-padded K rows contribute 0).
    h = jnp.dot(y_ref[...], w7_ref[...],
                preferred_element_type=jnp.float32) + b7_ref[...]
    h = jnp.maximum(h, 0.0).astype(jnp.bfloat16)             # fc7 + ReLU (drop7 = id)
    # Classifier contribution of this d3 slice.
    acc_ref[...] += jnp.dot(h, wc_ref[...], preferred_element_type=jnp.float32)

    @pl.when(k == pl.num_programs(1) - 1)
    def _finalize():
        o_ref[...] = acc_ref[...]


# ----------------------------------------------------------------------------
# Wrapper
# ----------------------------------------------------------------------------
def jig_head_forward(x, params, *, single_buffer_weights=True):
    """x: (B, d0, 3, 3) f32. Reproduces JIG_HEAD.forward (eval-mode) semantics."""
    B, d0 = x.shape[0], x.shape[1]
    w6, b6 = params["w6"], params["b6"]      # (d0, d1) bf16, (d1,) f32
    w7, b7 = params["w7"], params["b7"]      # (9*d1, d3) bf16, (d3,) f32
    wc, bc = params["wc"], params["bc"]      # (d3, d5) bf16, (d5,) f32
    d1, d3, d5 = w6.shape[1], w7.shape[1], wc.shape[1]
    assert w7.shape[0] == 9 * d1 and wc.shape[0] == d3

    # ---- lane-dense padding of the small feature dims --------------------
    d1p = _round_up(d1, 128)
    d5p = _round_up(d5, 128)

    # ---- generation-aware VMEM budget -------------------------------------
    try:
        vmem_cap = int(pltpu.get_tpu_info().vmem_capacity_bytes)
    except Exception:
        vmem_cap = 64 << 20          # conservative (v7x) fallback
    usable = (vmem_cap * 3) // 4

    # d3 tiling: only when w7 is too big to sit VMEM-resident (e.g. v7x).
    if 9 * d1p * d3 * 2 <= usable // 2:
        td3 = d3                                        # fully resident weights
    else:
        td3 = max(512, (usable // 2) // (9 * d1p * 2) // 128 * 128)
        td3 = min(td3, _round_up(d3, 128))
    d3p = _round_up(d3, td3)
    n_k = d3p // td3

    # Weight VMEM per step (single-buffered when resident, double when streamed).
    wbuf = 1 if n_k == 1 else 2
    weight_bytes = (d0 * d1p * 2 + d1p * 4
                    + wbuf * (9 * d1p * td3 * 2 + td3 * 4 + td3 * d5p * 2)
                    + d5p * 4)
    # Per batch-row VMEM: x dbl-buffered (bf16) + y scratch (bf16) + acc (f32)
    # + output block dbl-buffered (f32).
    per_row = 2 * 9 * d0 * 2 + 9 * d1p * 2 + d5p * 4 + 2 * d5p * 4
    bm_cap = max(8, (usable - weight_bytes) // per_row // 8 * 8)
    bm = min(bm_cap, 1024, _round_up(B, 8))
    bm = max(8, bm // 8 * 8)
    B_pad = _round_up(B, bm)
    n_b = B_pad // bm

    # ---- activation relayout (bf16 cast fused into it) --------------------
    # cat row q = i*3B + j*B + b; view(B,-1) row b consumes cat rows 9b..9b+8.
    # Group those rows so each batch tile is a rectangular block:
    #   x_grouped[r, b, :] = cat row (9b + r).
    xb = x.astype(jnp.bfloat16)
    x_grouped = (jnp.transpose(xb, (2, 3, 0, 1))      # (3,3,B,d0) = cat order
                 .reshape(B, 9, d0)                   # [b, r] = cat row 9b+r
                 .transpose(1, 0, 2))                 # (9, B, d0)
    if B_pad != B:
        x_grouped = jnp.pad(x_grouped, ((0, 0), (0, B_pad - B), (0, 0)))

    # ---- weight / bias padding (zeros -> mathematically a no-op) ----------
    w6p = jnp.pad(w6, ((0, 0), (0, d1p - d1)))
    b6p = jnp.pad(b6, (0, d1p - d1)).reshape(1, d1p).astype(jnp.float32)
    w7p = jnp.pad(w7.reshape(9, d1, d3),
                  ((0, 0), (0, d1p - d1), (0, d3p - d3))).reshape(9 * d1p, d3p)
    b7p = jnp.pad(b7, (0, d3p - d3)).reshape(1, d3p).astype(jnp.float32)
    wcp = jnp.pad(wc, ((0, d3p - d3), (0, d5p - d5)))
    bcp = jnp.pad(bc, (0, d5p - d5)).reshape(1, d5p).astype(jnp.float32)

    # ---- specs -------------------------------------------------------------
    def _invariant_spec(shape, index_map):
        # Grid-invariant operand -> single resident VMEM buffer.
        if single_buffer_weights:
            try:
                return pl.BlockSpec(shape, index_map, pipeline_mode=pl.Buffered(1))
            except Exception:
                pass
        return pl.BlockSpec(shape, index_map)

    def _w7_spec(shape, index_map):
        # Streamed (double-buffered) when d3 is tiled, resident otherwise.
        if n_k == 1:
            return _invariant_spec(shape, index_map)
        return pl.BlockSpec(shape, index_map)

    in_specs = [
        pl.BlockSpec((9, bm, d0), lambda i, k: (0, i, 0)),   # x: streamed over batch
        _invariant_spec((d0, d1p), lambda i, k: (0, 0)),     # w6
        _invariant_spec((1, d1p), lambda i, k: (0, 0)),      # b6
        _w7_spec((9 * d1p, td3), lambda i, k: (0, k)),       # w7 (d3-sliced)
        _w7_spec((1, td3), lambda i, k: (0, k)),             # b7
        _w7_spec((td3, d5p), lambda i, k: (k, 0)),           # wc
        _invariant_spec((1, d5p), lambda i, k: (0, 0)),      # bc
    ]
    out_spec = pl.BlockSpec((bm, d5p), lambda i, k: (i, 0))

    flops = (2 * 9 * B_pad * d0 * d1p            # fc6
             + 2 * B_pad * (9 * d1p) * d3p       # fc7 (deep-K)
             + 2 * B_pad * d3p * d5p)            # classifier
    bytes_accessed = (9 * B_pad * d0 * 2                              # x bf16
                      + (d0 * d1p + 9 * d1p * d3p + d3p * d5p) * 2    # bf16 weights
                      + (d1p + d3p + d5p) * 4                         # f32 biases
                      + B_pad * d5p * 4)                              # output

    out = pl.pallas_call(
        _jig_fused_kernel,
        out_shape=jax.ShapeDtypeStruct((B_pad, d5p), jnp.float32),
        grid=(n_b, n_k),
        in_specs=in_specs,
        out_specs=out_spec,
        scratch_shapes=[
            pltpu.VMEM((bm, 9 * d1p), jnp.bfloat16),   # staged fc6 output
            pltpu.VMEM((bm, d5p), jnp.float32),        # classifier accumulator
        ],
        compiler_params=pltpu.CompilerParams(
            dimension_semantics=("parallel", "arbitrary"),
            vmem_limit_bytes=int(usable),
        ),
        cost_estimate=pl.CostEstimate(
            flops=flops, transcendentals=0, bytes_accessed=bytes_accessed),
    )(x_grouped, w6p, b6p, w7p, b7p, wcp, bcp)

    return out[:B, :d5]


# ----------------------------------------------------------------------------
# Pure-JAX mirror of the kernel math (bf16 MXU operands, f32 accumulation).
# ----------------------------------------------------------------------------
def jig_head_reference(x, params):
    B, d0 = x.shape[0], x.shape[1]
    x_flat = jnp.transpose(x, (2, 3, 0, 1)).reshape(9 * B, d0)
    w6 = params["w6"].astype(jnp.float32)
    w7 = params["w7"].astype(jnp.float32)
    wc = params["wc"].astype(jnp.float32)

    def bf16_round(v):
        return v.astype(jnp.bfloat16).astype(jnp.float32)

    z = jnp.maximum(bf16_round(x_flat) @ w6 + params["b6"], 0.0)   # (9B, d1)
    y = z.reshape(B, -1)                                           # (B, 9*d1)
    h = jnp.maximum(bf16_round(y) @ w7 + params["b7"], 0.0)        # (B, d3)
    return bf16_round(h) @ wc + params["bc"]                       # (B, d5)


# ----------------------------------------------------------------------------
# Deterministic parameter init (PyTorch Linear default U(+-1/sqrt(fan_in)));
# weights stored in bf16 (MXU operands / halved DMA), biases in f32.
# ----------------------------------------------------------------------------
def init_params(key, dims):
    d0, d1, d2, d3, d4, d5 = dims
    assert d2 == 9 * d1 and d4 == d3
    ks = jax.random.split(key, 6)

    def uinit(k, shape, fan_in):
        bound = 1.0 / float(fan_in) ** 0.5
        return jax.random.uniform(k, shape, jnp.float32, -bound, bound)

    return {
        "w6": uinit(ks[0], (d0, d1), d0).astype(jnp.bfloat16),
        "b6": uinit(ks[1], (d1,), d0),
        "w7": uinit(ks[2], (d2, d3), d2).astype(jnp.bfloat16),
        "b7": uinit(ks[3], (d3,), d2),
        "wc": uinit(ks[4], (d4, d5), d4).astype(jnp.bfloat16),
        "bc": uinit(ks[5], (d5,), d4),
    }


if __name__ == "__main__":
    # Small, consistent shapes: per-patch feature dim 32, fc6 out 64,
    # fc7 in = 9*64 = 576, fc7 out 128, classifier 128 -> 24 permutations.
    dims = [32, 64, 576, 128, 128, 24]
    B = 2

    key = jax.random.PRNGKey(0)
    kx, kp = jax.random.split(key)
    x = jax.random.normal(kx, (B, dims[0], 3, 3), dtype=jnp.float32)
    params = init_params(kp, dims)

    try:
        out = jax.block_until_ready(jax.jit(jig_head_forward)(x, params))
    except Exception:
        # Fallback for jax/Mosaic versions that reject pl.Buffered(1) on
        # grid-invariant weight specs: retry with default double-buffering.
        out = jax.block_until_ready(
            jax.jit(lambda a, p: jig_head_forward(a, p, single_buffer_weights=False))(
                x, params))

    assert out.shape == (B, dims[5]), out.shape
    assert bool(jnp.all(jnp.isfinite(out)))

    ref = jig_head_reference(x, params)
    assert jnp.allclose(out, ref, rtol=2e-2, atol=2e-2), (
        "max abs err", float(jnp.max(jnp.abs(out - ref))))
    print("KERNEL_OK")
</pallas_src>

<mosaic_0001>
module attributes {stable_mosaic.version = 11 : i64} {
  func.func @_jig_fused_kernel(%arg0: i32, %arg1: i32, %arg2: memref<9x8x32xbf16, #tpu.memory_space<vmem>>, %arg3: memref<32x128xbf16, #tpu.memory_space<vmem>>, %arg4: memref<1x128xf32, #tpu.memory_space<vmem>>, %arg5: memref<1152x128xbf16, #tpu.memory_space<vmem>>, %arg6: memref<1x128xf32, #tpu.memory_space<vmem>>, %arg7: memref<128x128xbf16, #tpu.memory_space<vmem>>, %arg8: memref<1x128xf32, #tpu.memory_space<vmem>>, %arg9: memref<8x128xf32, #tpu.memory_space<vmem>>, %arg10: memref<8x1152xbf16, #tpu.memory_space<vmem>>, %arg11: memref<8x128xf32, #tpu.memory_space<vmem>>) attributes {dimension_semantics = [#tpu.dimension_semantics<parallel>, #tpu.dimension_semantics<arbitrary>], iteration_bounds = array<i64: 1, 1>, scalar_prefetch = 0 : i64, scratch_operands = 2 : i64, tpu.core_type = #tpu.core_type<tc>, window_params = [{transform_indices = @transform_0, window_bounds = array<i64: 9, 8, 32>}, {pipeline_mode = #tpu.pipeline_mode<synchronous>, transform_indices = @transform_1, window_bounds = array<i64: 32, 128>}, {pipeline_mode = #tpu.pipeline_mode<synchronous>, transform_indices = @transform_2, window_bounds = array<i64: 1, 128>}, {pipeline_mode = #tpu.pipeline_mode<synchronous>, transform_indices = @transform_3, window_bounds = array<i64: 1152, 128>}, {pipeline_mode = #tpu.pipeline_mode<synchronous>, transform_indices = @transform_4, window_bounds = array<i64: 1, 128>}, {pipeline_mode = #tpu.pipeline_mode<synchronous>, transform_indices = @transform_5, window_bounds = array<i64: 128, 128>}, {pipeline_mode = #tpu.pipeline_mode<synchronous>, transform_indices = @transform_6, window_bounds = array<i64: 1, 128>}, {transform_indices = @transform_7, window_bounds = array<i64: 8, 128>}]} {
    %c0_i32 = arith.constant 0 : i32
    %0 = arith.cmpi eq, %arg1, %c0_i32 : i32
    %1 = arith.extui %0 : i1 to i32
    %c0_i32_0 = arith.constant 0 : i32
    %2 = arith.cmpi ne, %1, %c0_i32_0 : i32
    scf.if %2 {
      %c0_16 = arith.constant 0 : index
      %c0_17 = arith.constant 0 : index
      %20 = vector.load %arg4[%c0_16, %c0_17] : memref<1x128xf32, #tpu.memory_space<vmem>>, vector<1x128xf32>
      %21 = vector.shape_cast %20 : vector<1x128xf32> to vector<1x128xf32>
      %22 = vector.broadcast %21 : vector<1x128xf32> to vector<8x128xf32>
      %c0_18 = arith.constant 0 : index
      %c0_19 = arith.constant 0 : index
      %c0_20 = arith.constant 0 : index
      %23 = vector.load %arg2[%c0_18, %c0_19, %c0_20] : memref<9x8x32xbf16, #tpu.memory_space<vmem>>, vector<1x8x32xbf16>
      %24 = vector.shape_cast %23 : vector<1x8x32xbf16> to vector<8x32xbf16>
      %c0_21 = arith.constant 0 : index
      %c0_22 = arith.constant 0 : index
      %25 = vector.load %arg3[%c0_21, %c0_22] : memref<32x128xbf16, #tpu.memory_space<vmem>>, vector<32x128xbf16>
      %cst_23 = arith.constant dense<0.000000e+00> : vector<8x128xf32>
      %26 = tpu.matmul %24, %25, %cst_23 {dimension_numbers = #tpu.dot_dimension_numbers<[1], [0], [0], [1], [0, 0, 1, 1], [], []>} : vector<8x32xbf16>, vector<32x128xbf16>, vector<8x128xf32> -> vector<8x128xf32>
      %27 = arith.addf %26, %22 : vector<8x128xf32>
      %cst_24 = arith.constant 0.000000e+00 : f32
      %28 = vector.broadcast %cst_24 : f32 to vector<8x128xf32>
      %29 = arith.maximumf %27, %28 : vector<8x128xf32>
      %30 = arith.truncf %29 : vector<8x128xf32> to vector<8x128xbf16>
      %c0_25 = arith.constant 0 : index
      %c0_26 = arith.constant 0 : index
      %31 = vector.load %arg10[%c0_25, %c0_26] : memref<8x1152xbf16, #tpu.memory_space<vmem>>, vector<8x128xbf16>
      tpu.vector_store %arg10[%c0_25, %c0_26], %30 {strides = array<i32>} : memref<8x1152xbf16, #tpu.memory_space<vmem>>, vector<8x128xbf16>,
      %c1 = arith.constant 1 : index
      %c0_27 = arith.constant 0 : index
      %c0_28 = arith.constant 0 : index
      %32 = vector.load %arg2[%c1, %c0_27, %c0_28] : memref<9x8x32xbf16, #tpu.memory_space<vmem>>, vector<1x8x32xbf16>
      %33 = vector.shape_cast %32 : vector<1x8x32xbf16> to vector<8x32xbf16>
      %c0_29 = arith.constant 0 : index
      %c0_30 = arith.constant 0 : index
      %34 = vector.load %arg3[%c0_29, %c0_30] : memref<32x128xbf16, #tpu.memory_space<vmem>>, vector<32x128xbf16>
      %cst_31 = arith.constant dense<0.000000e+00> : vector<8x128xf32>
      %35 = tpu.matmul %33, %34, %cst_31 {dimension_numbers = #tpu.dot_dimension_numbers<[1], [0], [0], [1], [0, 0, 1, 1], [], []>} : vector<8x32xbf16>, vector<32x128xbf16>, vector<8x128xf32> -> vector<8x128xf32>
      %36 = arith.addf %35, %22 : vector<8x128xf32>
      %cst_32 = arith.constant 0.000000e+00 : f32
      %37 = vector.broadcast %cst_32 : f32 to vector<8x128xf32>
      %38 = arith.maximumf %36, %37 : vector<8x128xf32>
      %39 = arith.truncf %38 : vector<8x128xf32> to vector<8x128xbf16>
      %c0_33 = arith.constant 0 : index
      %c128 = arith.constant 128 : index
      %40 = vector.load %arg10[%c0_33, %c128] : memref<8x1152xbf16, #tpu.memory_space<vmem>>, vector<8x128xbf16>
      tpu.vector_store %arg10[%c0_33, %c128], %39 {strides = array<i32>} : memref<8x1152xbf16, #tpu.memory_space<vmem>>, vector<8x128xbf16>,
      %c2 = arith.constant 2 : index
      %c0_34 = arith.constant 0 : index
      %c0_35 = arith.constant 0 : index
      %41 = vector.load %arg2[%c2, %c0_34, %c0_35] : memref<9x8x32xbf16, #tpu.memory_space<vmem>>, vector<1x8x32xbf16>
      %42 = vector.shape_cast %41 : vector<1x8x32xbf16> to vector<8x32xbf16>
      %c0_36 = arith.constant 0 : index
      %c0_37 = arith.constant 0 : index
      %43 = vector.load %arg3[%c0_36, %c0_37] : memref<32x128xbf16, #tpu.memory_space<vmem>>, vector<32x128xbf16>
      %cst_38 = arith.constant dense<0.000000e+00> : vector<8x128xf32>
      %44 = tpu.matmul %42, %43, %cst_38 {dimension_numbers = #tpu.dot_dimension_numbers<[1], [0], [0], [1], [0, 0, 1, 1], [], []>} : vector<8x32xbf16>, vector<32x128xbf16>, vector<8x128xf32> -> vector<8x128xf32>
      %45 = arith.addf %44, %22 : vector<8x128xf32>
      %cst_39 = arith.constant 0.000000e+00 : f32
      %46 = vector.broadcast %cst_39 : f32 to vector<8x128xf32>
      %47 = arith.maximumf %45, %46 : vector<8x128xf32>
      %48 = arith.truncf %47 : vector<8x128xf32> to vector<8x128xbf16>
      %c0_40 = arith.constant 0 : index
      %c256 = arith.constant 256 : index
      %49 = vector.load %arg10[%c0_40, %c256] : memref<8x1152xbf16, #tpu.memory_space<vmem>>, vector<8x128xbf16>
      tpu.vector_store %arg10[%c0_40, %c256], %48 {strides = array<i32>} : memref<8x1152xbf16, #tpu.memory_space<vmem>>, vector<8x128xbf16>,
      %c3 = arith.constant 3 : index
      %c0_41 = arith.constant 0 : index
      %c0_42 = arith.constant 0 : index
      %50 = vector.load %arg2[%c3, %c0_41, %c0_42] : memref<9x8x32xbf16, #tpu.memory_space<vmem>>, vector<1x8x32xbf16>
      %51 = vector.shape_cast %50 : vector<1x8x32xbf16> to vector<8x32xbf16>
      %c0_43 = arith.constant 0 : index
      %c0_44 = arith.constant 0 : index
      %52 = vector.load %arg3[%c0_43, %c0_44] : memref<32x128xbf16, #tpu.memory_space<vmem>>, vector<32x128xbf16>
      %cst_45 = arith.constant dense<0.000000e+00> : vector<8x128xf32>
      %53 = tpu.matmul %51, %52, %cst_45 {dimension_numbers = #tpu.dot_dimension_numbers<[1], [0], [0], [1], [0, 0, 1, 1], [], []>} : vector<8x32xbf16>, vector<32x128xbf16>, vector<8x128xf32> -> vector<8x128xf32>
      %54 = arith.addf %53, %22 : vector<8x128xf32>
      %cst_46 = arith.constant 0.000000e+00 : f32
      %55 = vector.broadcast %cst_46 : f32 to vector<8x128xf32>
      %56 = arith.maximumf %54, %55 : vector<8x128xf32>
      %57 = arith.truncf %56 : vector<8x128xf32> to vector<8x128xbf16>
      %c0_47 = arith.constant 0 : index
      %c384 = arith.constant 384 : index
      %58 = vector.load %arg10[%c0_47, %c384] : memref<8x1152xbf16, #tpu.memory_space<vmem>>, vector<8x128xbf16>
      tpu.vector_store %arg10[%c0_47, %c384], %57 {strides = array<i32>} : memref<8x1152xbf16, #tpu.memory_space<vmem>>, vector<8x128xbf16>,
      %c4 = arith.constant 4 : index
      %c0_48 = arith.constant 0 : index
      %c0_49 = arith.constant 0 : index
      %59 = vector.load %arg2[%c4, %c0_48, %c0_49] : memref<9x8x32xbf16, #tpu.memory_space<vmem>>, vector<1x8x32xbf16>
      %60 = vector.shape_cast %59 : vector<1x8x32xbf16> to vector<8x32xbf16>
      %c0_50 = arith.constant 0 : index
      %c0_51 = arith.constant 0 : index
      %61 = vector.load %arg3[%c0_50, %c0_51] : memref<32x128xbf16, #tpu.memory_space<vmem>>, vector<32x128xbf16>
      %cst_52 = arith.constant dense<0.000000e+00> : vector<8x128xf32>
      %62 = tpu.matmul %60, %61, %cst_52 {dimension_numbers = #tpu.dot_dimension_numbers<[1], [0], [0], [1], [0, 0, 1, 1], [], []>} : vector<8x32xbf16>, vector<32x128xbf16>, vector<8x128xf32> -> vector<8x128xf32>
      %63 = arith.addf %62, %22 : vector<8x128xf32>
      %cst_53 = arith.constant 0.000000e+00 : f32
      %64 = vector.broadcast %cst_53 : f32 to vector<8x128xf32>
      %65 = arith.maximumf %63, %64 : vector<8x128xf32>
      %66 = arith.truncf %65 : vector<8x128xf32> to vector<8x128xbf16>
      %c0_54 = arith.constant 0 : index
      %c512 = arith.constant 512 : index
      %67 = vector.load %arg10[%c0_54, %c512] : memref<8x1152xbf16, #tpu.memory_space<vmem>>, vector<8x128xbf16>
      tpu.vector_store %arg10[%c0_54, %c512], %66 {strides = array<i32>} : memref<8x1152xbf16, #tpu.memory_space<vmem>>, vector<8x128xbf16>,
      %c5 = arith.constant 5 : index
      %c0_55 = arith.constant 0 : index
      %c0_56 = arith.constant 0 : index
      %68 = vector.load %arg2[%c5, %c0_55, %c0_56] : memref<9x8x32xbf16, #tpu.memory_space<vmem>>, vector<1x8x32xbf16>
      %69 = vector.shape_cast %68 : vector<1x8x32xbf16> to vector<8x32xbf16>
      %c0_57 = arith.constant 0 : index
      %c0_58 = arith.constant 0 : index
      %70 = vector.load %arg3[%c0_57, %c0_58] : memref<32x128xbf16, #tpu.memory_space<vmem>>, vector<32x128xbf16>
      %cst_59 = arith.constant dense<0.000000e+00> : vector<8x128xf32>
      %71 = tpu.matmul %69, %70, %cst_59 {dimension_numbers = #tpu.dot_dimension_numbers<[1], [0], [0], [1], [0, 0, 1, 1], [], []>} : vector<8x32xbf16>, vector<32x128xbf16>, vector<8x128xf32> -> vector<8x128xf32>
      %72 = arith.addf %71, %22 : vector<8x128xf32>
      %cst_60 = arith.constant 0.000000e+00 : f32
      %73 = vector.broadcast %cst_60 : f32 to vector<8x128xf32>
      %74 = arith.maximumf %72, %73 : vector<8x128xf32>
      %75 = arith.truncf %74 : vector<8x128xf32> to vector<8x128xbf16>
      %c0_61 = arith.constant 0 : index
      %c640 = arith.constant 640 : index
      %76 = vector.load %arg10[%c0_61, %c640] : memref<8x1152xbf16, #tpu.memory_space<vmem>>, vector<8x128xbf16>
      tpu.vector_store %arg10[%c0_61, %c640], %75 {strides = array<i32>} : memref<8x1152xbf16, #tpu.memory_space<vmem>>, vector<8x128xbf16>,
      %c6 = arith.constant 6 : index
      %c0_62 = arith.constant 0 : index
      %c0_63 = arith.constant 0 : index
      %77 = vector.load %arg2[%c6, %c0_62, %c0_63] : memref<9x8x32xbf16, #tpu.memory_space<vmem>>, vector<1x8x32xbf16>
      %78 = vector.shape_cast %77 : vector<1x8x32xbf16> to vector<8x32xbf16>
      %c0_64 = arith.constant 0 : index
      %c0_65 = arith.constant 0 : index
      %79 = vector.load %arg3[%c0_64, %c0_65] : memref<32x128xbf16, #tpu.memory_space<vmem>>, vector<32x128xbf16>
      %cst_66 = arith.constant dense<0.000000e+00> : vector<8x128xf32>
      %80 = tpu.matmul %78, %79, %cst_66 {dimension_numbers = #tpu.dot_dimension_numbers<[1], [0], [0], [1], [0, 0, 1, 1], [], []>} : vector<8x32xbf16>, vector<32x128xbf16>, vector<8x128xf32> -> vector<8x128xf32>
      %81 = arith.addf %80, %22 : vector<8x128xf32>
      %cst_67 = arith.constant 0.000000e+00 : f32
      %82 = vector.broadcast %cst_67 : f32 to vector<8x128xf32>
      %83 = arith.maximumf %81, %82 : vector<8x128xf32>
      %84 = arith.truncf %83 : vector<8x128xf32> to vector<8x128xbf16>
      %c0_68 = arith.constant 0 : index
      %c768 = arith.constant 768 : index
      %85 = vector.load %arg10[%c0_68, %c768] : memref<8x1152xbf16, #tpu.memory_space<vmem>>, vector<8x128xbf16>
      tpu.vector_store %arg10[%c0_68, %c768], %84 {strides = array<i32>} : memref<8x1152xbf16, #tpu.memory_space<vmem>>, vector<8x128xbf16>,
      %c7 = arith.constant 7 : index
      %c0_69 = arith.constant 0 : index
      %c0_70 = arith.constant 0 : index
      %86 = vector.load %arg2[%c7, %c0_69, %c0_70] : memref<9x8x32xbf16, #tpu.memory_space<vmem>>, vector<1x8x32xbf16>
      %87 = vector.shape_cast %86 : vector<1x8x32xbf16> to vector<8x32xbf16>
      %c0_71 = arith.constant 0 : index
      %c0_72 = arith.constant 0 : index
      %88 = vector.load %arg3[%c0_71, %c0_72] : memref<32x128xbf16, #tpu.memory_space<vmem>>, vector<32x128xbf16>
      %cst_73 = arith.constant dense<0.000000e+00> : vector<8x128xf32>
      %89 = tpu.matmul %87, %88, %cst_73 {dimension_numbers = #tpu.dot_dimension_numbers<[1], [0], [0], [1], [0, 0, 1, 1], [], []>} : vector<8x32xbf16>, vector<32x128xbf16>, vector<8x128xf32> -> vector<8x128xf32>
      %90 = arith.addf %89, %22 : vector<8x128xf32>
      %cst_74 = arith.constant 0.000000e+00 : f32
      %91 = vector.broadcast %cst_74 : f32 to vector<8x128xf32>
      %92 = arith.maximumf %90, %91 : vector<8x128xf32>
      %93 = arith.truncf %92 : vector<8x128xf32> to vector<8x128xbf16>
      %c0_75 = arith.constant 0 : index
      %c896 = arith.constant 896 : index
      %94 = vector.load %arg10[%c0_75, %c896] : memref<8x1152xbf16, #tpu.memory_space<vmem>>, vector<8x128xbf16>
      tpu.vector_store %arg10[%c0_75, %c896], %93 {strides = array<i32>} : memref<8x1152xbf16, #tpu.memory_space<vmem>>, vector<8x128xbf16>,
      %c8 = arith.constant 8 : index
      %c0_76 = arith.constant 0 : index
      %c0_77 = arith.constant 0 : index
      %95 = vector.load %arg2[%c8, %c0_76, %c0_77] : memref<9x8x32xbf16, #tpu.memory_space<vmem>>, vector<1x8x32xbf16>
      %96 = vector.shape_cast %95 : vector<1x8x32xbf16> to vector<8x32xbf16>
      %c0_78 = arith.constant 0 : index
      %c0_79 = arith.constant 0 : index
      %97 = vector.load %arg3[%c0_78, %c0_79] : memref<32x128xbf16, #tpu.memory_space<vmem>>, vector<32x128xbf16>
      %cst_80 = arith.constant dense<0.000000e+00> : vector<8x128xf32>
      %98 = tpu.matmul %96, %97, %cst_80 {dimension_numbers = #tpu.dot_dimension_numbers<[1], [0], [0], [1], [0, 0, 1, 1], [], []>} : vector<8x32xbf16>, vector<32x128xbf16>, vector<8x128xf32> -> vector<8x128xf32>
      %99 = arith.addf %98, %22 : vector<8x128xf32>
      %cst_81 = arith.constant 0.000000e+00 : f32
      %100 = vector.broadcast %cst_81 : f32 to vector<8x128xf32>
      %101 = arith.maximumf %99, %100 : vector<8x128xf32>
      %102 = arith.truncf %101 : vector<8x128xf32> to vector<8x128xbf16>
      %c0_82 = arith.constant 0 : index
      %c1024 = arith.constant 1024 : index
      %103 = vector.load %arg10[%c0_82, %c1024] : memref<8x1152xbf16, #tpu.memory_space<vmem>>, vector<8x128xbf16>
      tpu.vector_store %arg10[%c0_82, %c1024], %102 {strides = array<i32>} : memref<8x1152xbf16, #tpu.memory_space<vmem>>, vector<8x128xbf16>,
      %c0_83 = arith.constant 0 : index
      %c0_84 = arith.constant 0 : index
      %104 = vector.load %arg8[%c0_83, %c0_84] : memref<1x128xf32, #tpu.memory_space<vmem>>, vector<1x128xf32>
      %105 = vector.shape_cast %104 : vector<1x128xf32> to vector<1x128xf32>
      %106 = vector.broadcast %105 : vector<1x128xf32> to vector<8x128xf32>
      %c0_85 = arith.constant 0 : index
      %c0_86 = arith.constant 0 : index
      %107 = vector.load %arg11[%c0_85, %c0_86] : memref<8x128xf32, #tpu.memory_space<vmem>>, vector<8x128xf32>
      tpu.vector_store %arg11[%c0_85, %c0_86], %106 {strides = array<i32>} : memref<8x128xf32, #tpu.memory_space<vmem>>, vector<8x128xf32>,
    } else {
    }
    %c0 = arith.constant 0 : index
    %c0_1 = arith.constant 0 : index
    %3 = vector.load %arg10[%c0, %c0_1] : memref<8x1152xbf16, #tpu.memory_space<vmem>>, vector<8x1152xbf16>
    %c0_2 = arith.constant 0 : index
    %c0_3 = arith.constant 0 : index
    %4 = vector.load %arg5[%c0_2, %c0_3] : memref<1152x128xbf16, #tpu.memory_space<vmem>>, vector<1152x128xbf16>
    %cst = arith.constant dense<0.000000e+00> : vector<8x128xf32>
    %5 = tpu.matmul %3, %4, %cst {dimension_numbers = #tpu.dot_dimension_numbers<[1], [0], [0], [1], [0, 0, 1, 1], [], []>} : vector<8x1152xbf16>, vector<1152x128xbf16>, vector<8x128xf32> -> vector<8x128xf32>
    %c0_4 = arith.constant 0 : index
    %c0_5 = arith.constant 0 : index
    %6 = vector.load %arg6[%c0_4, %c0_5] : memref<1x128xf32, #tpu.memory_space<vmem>>, vector<1x128xf32>
    %7 = vector.broadcast %6 : vector<1x128xf32> to vector<8x128xf32>
    %8 = arith.addf %5, %7 : vector<8x128xf32>
    %cst_6 = arith.constant 0.000000e+00 : f32
    %9 = vector.broadcast %cst_6 : f32 to vector<8x128xf32>
    %10 = arith.maximumf %8, %9 : vector<8x128xf32>
    %11 = arith.truncf %10 : vector<8x128xf32> to vector<8x128xbf16>
    %c0_7 = arith.constant 0 : index
    %c0_8 = arith.constant 0 : index
    %12 = vector.load %arg11[%c0_7, %c0_8] : memref<8x128xf32, #tpu.memory_space<vmem>>, vector<8x128xf32>
    %c0_9 = arith.constant 0 : index
    %c0_10 = arith.constant 0 : index
    %13 = vector.load %arg7[%c0_9, %c0_10] : memref<128x128xbf16, #tpu.memory_space<vmem>>, vector<128x128xbf16>
    %cst_11 = arith.constant dense<0.000000e+00> : vector<8x128xf32>
    %14 = tpu.matmul %11, %13, %cst_11 {dimension_numbers = #tpu.dot_dimension_numbers<[1], [0], [0], [1], [0, 0, 1, 1], [], []>} : vector<8x128xbf16>, vector<128x128xbf16>, vector<8x128xf32> -> vector<8x128xf32>
    %15 = arith.addf %12, %14 : vector<8x128xf32>
    %c0_12 = arith.constant 0 : index
    %c0_13 = arith.constant 0 : index
    %16 = vector.load %arg11[%c0_12, %c0_13] : memref<8x128xf32, #tpu.memory_space<vmem>>, vector<8x128xf32>
    tpu.vector_store %arg11[%c0_12, %c0_13], %15 {strides = array<i32>} : memref<8x128xf32, #tpu.memory_space<vmem>>, vector<8x128xf32>,
    %c0_i32_14 = arith.constant 0 : i32
    %17 = arith.cmpi eq, %arg1, %c0_i32_14 : i32
    %18 = arith.extui %17 : i1 to i32
    %c0_i32_15 = arith.constant 0 : i32
    %19 = arith.cmpi ne, %18, %c0_i32_15 : i32
    scf.if %19 {
      %c0_16 = arith.constant 0 : index
      %c0_17 = arith.constant 0 : index
      %20 = vector.load %arg11[%c0_16, %c0_17] : memref<8x128xf32, #tpu.memory_space<vmem>>, vector<8x128xf32>
      %c0_18 = arith.constant 0 : index
      %c0_19 = arith.constant 0 : index
      %21 = vector.load %arg9[%c0_18, %c0_19] : memref<8x128xf32, #tpu.memory_space<vmem>>, vector<8x128xf32>
      tpu.vector_store %arg9[%c0_18, %c0_19], %20 {strides = array<i32>} : memref<8x128xf32, #tpu.memory_space<vmem>>, vector<8x128xf32>,
    } else {
    }
    return
  }
  func.func @transform_0(%arg0: i32, %arg1: i32) -> (i32, i32, i32) {
    %c0_i32 = arith.constant 0 : i32
    %c0_i32_0 = arith.constant 0 : i32
    %c0_i32_1 = arith.constant 0 : i32
    return %c0_i32, %arg0, %c0_i32_0 : i32, i32, i32
  }
  func.func @transform_1(%arg0: i32, %arg1: i32) -> (i32, i32) {
    %c0_i32 = arith.constant 0 : i32
    %c0_i32_0 = arith.constant 0 : i32
    %c0_i32_1 = arith.constant 0 : i32
    return %c0_i32, %c0_i32_0 : i32, i32
  }
  func.func @transform_2(%arg0: i32, %arg1: i32) -> (i32, i32) {
    %c0_i32 = arith.constant 0 : i32
    %c0_i32_0 = arith.constant 0 : i32
    %c0_i32_1 = arith.constant 0 : i32
    return %c0_i32, %c0_i32_0 : i32, i32
  }
  func.func @transform_3(%arg0: i32, %arg1: i32) -> (i32, i32) {
    %c0_i32 = arith.constant 0 : i32
    %c0_i32_0 = arith.constant 0 : i32
    return %c0_i32, %arg1 : i32, i32
  }
  func.func @transform_4(%arg0: i32, %arg1: i32) -> (i32, i32) {
    %c0_i32 = arith.constant 0 : i32
    %c0_i32_0 = arith.constant 0 : i32
    return %c0_i32, %arg1 : i32, i32
  }
  func.func @transform_5(%arg0: i32, %arg1: i32) -> (i32, i32) {
    %c0_i32 = arith.constant 0 : i32
    %c0_i32_0 = arith.constant 0 : i32
    return %arg1, %c0_i32 : i32, i32
  }
  func.func @transform_6(%arg0: i32, %arg1: i32) -> (i32, i32) {
    %c0_i32 = arith.constant 0 : i32
    %c0_i32_0 = arith.constant 0 : i32
    %c0_i32_1 = arith.constant 0 : i32
    return %c0_i32, %c0_i32_0 : i32, i32
  }
  func.func @transform_7(%arg0: i32, %arg1: i32) -> (i32, i32) {
    %c0_i32 = arith.constant 0 : i32
    %c0_i32_0 = arith.constant 0 : i32
    return %arg0, %c0_i32 : i32, i32
  }
}

module attributes {stable_mosaic.version = 11 : i64} {
  func.func @_jig_fused_kernel(%arg0: i32, %arg1: i32, %arg2: memref<9x8x32xbf16, #tpu.memory_space<vmem>>, %arg3: memref<32x128xbf16, #tpu.memory_space<vmem>>, %arg4: memref<1x128xf32, #tpu.memory_space<vmem>>, %arg5: memref<1152x128xbf16, #tpu.memory_space<vmem>>, %arg6: memref<1x128xf32, #tpu.memory_space<vmem>>, %arg7: memref<128x128xbf16, #tpu.memory_space<vmem>>, %arg8: memref<1x128xf32, #tpu.memory_space<vmem>>, %arg9: memref<8x128xf32, #tpu.memory_space<vmem>>, %arg10: memref<8x1152xbf16, #tpu.memory_space<vmem>>, %arg11: memref<8x128xf32, #tpu.memory_space<vmem>>) attributes {dimension_semantics = [#tpu.dimension_semantics<parallel>, #tpu.dimension_semantics<arbitrary>], iteration_bounds = array<i64: 1, 1>, scalar_prefetch = 0 : i64, scratch_operands = 2 : i64, tpu.core_type = #tpu.core_type<tc>, window_params = [{transform_indices = @transform_0, window_bounds = array<i64: 9, 8, 32>}, {pipeline_mode = #tpu.pipeline_mode<synchronous>, transform_indices = @transform_1, window_bounds = array<i64: 32, 128>}, {pipeline_mode = #tpu.pipeline_mode<synchronous>, transform_indices = @transform_2, window_bounds = array<i64: 1, 128>}, {transform_indices = @transform_3, window_bounds = array<i64: 1152, 128>}, {transform_indices = @transform_4, window_bounds = array<i64: 1, 128>}, {transform_indices = @transform_5, window_bounds = array<i64: 128, 128>}, {pipeline_mode = #tpu.pipeline_mode<synchronous>, transform_indices = @transform_6, window_bounds = array<i64: 1, 128>}, {transform_indices = @transform_7, window_bounds = array<i64: 8, 128>}]} {
    %c0_i32 = arith.constant 0 : i32
    %0 = arith.cmpi eq, %arg1, %c0_i32 : i32
    %1 = arith.extui %0 : i1 to i32
    %c0_i32_0 = arith.constant 0 : i32
    %2 = arith.cmpi ne, %1, %c0_i32_0 : i32
    scf.if %2 {
      %c0_16 = arith.constant 0 : index
      %c0_17 = arith.constant 0 : index
      %20 = vector.load %arg4[%c0_16, %c0_17] : memref<1x128xf32, #tpu.memory_space<vmem>>, vector<1x128xf32>
      %21 = vector.shape_cast %20 : vector<1x128xf32> to vector<1x128xf32>
      %22 = vector.broadcast %21 : vector<1x128xf32> to vector<8x128xf32>
      %c0_18 = arith.constant 0 : index
      %c0_19 = arith.constant 0 : index
      %c0_20 = arith.constant 0 : index
      %23 = vector.load %arg2[%c0_18, %c0_19, %c0_20] : memref<9x8x32xbf16, #tpu.memory_space<vmem>>, vector<1x8x32xbf16>
      %24 = vector.shape_cast %23 : vector<1x8x32xbf16> to vector<8x32xbf16>
      %c0_21 = arith.constant 0 : index
      %c0_22 = arith.constant 0 : index
      %25 = vector.load %arg3[%c0_21, %c0_22] : memref<32x128xbf16, #tpu.memory_space<vmem>>, vector<32x128xbf16>
      %cst_23 = arith.constant dense<0.000000e+00> : vector<8x128xf32>
      %26 = tpu.matmul %24, %25, %cst_23 {dimension_numbers = #tpu.dot_dimension_numbers<[1], [0], [0], [1], [0, 0, 1, 1], [], []>} : vector<8x32xbf16>, vector<32x128xbf16>, vector<8x128xf32> -> vector<8x128xf32>
      %27 = arith.addf %26, %22 : vector<8x128xf32>
      %cst_24 = arith.constant 0.000000e+00 : f32
      %28 = vector.broadcast %cst_24 : f32 to vector<8x128xf32>
      %29 = arith.maximumf %27, %28 : vector<8x128xf32>
      %30 = arith.truncf %29 : vector<8x128xf32> to vector<8x128xbf16>
      %c0_25 = arith.constant 0 : index
      %c0_26 = arith.constant 0 : index
      %31 = vector.load %arg10[%c0_25, %c0_26] : memref<8x1152xbf16, #tpu.memory_space<vmem>>, vector<8x128xbf16>
      tpu.vector_store %arg10[%c0_25, %c0_26], %30 {strides = array<i32>} : memref<8x1152xbf16, #tpu.memory_space<vmem>>, vector<8x128xbf16>,
      %c1 = arith.constant 1 : index
      %c0_27 = arith.constant 0 : index
      %c0_28 = arith.constant 0 : index
      %32 = vector.load %arg2[%c1, %c0_27, %c0_28] : memref<9x8x32xbf16, #tpu.memory_space<vmem>>, vector<1x8x32xbf16>
      %33 = vector.shape_cast %32 : vector<1x8x32xbf16> to vector<8x32xbf16>
      %c0_29 = arith.constant 0 : index
      %c0_30 = arith.constant 0 : index
      %34 = vector.load %arg3[%c0_29, %c0_30] : memref<32x128xbf16, #tpu.memory_space<vmem>>, vector<32x128xbf16>
      %cst_31 = arith.constant dense<0.000000e+00> : vector<8x128xf32>
      %35 = tpu.matmul %33, %34, %cst_31 {dimension_numbers = #tpu.dot_dimension_numbers<[1], [0], [0], [1], [0, 0, 1, 1], [], []>} : vector<8x32xbf16>, vector<32x128xbf16>, vector<8x128xf32> -> vector<8x128xf32>
      %36 = arith.addf %35, %22 : vector<8x128xf32>
      %cst_32 = arith.constant 0.000000e+00 : f32
      %37 = vector.broadcast %cst_32 : f32 to vector<8x128xf32>
      %38 = arith.maximumf %36, %37 : vector<8x128xf32>
      %39 = arith.truncf %38 : vector<8x128xf32> to vector<8x128xbf16>
      %c0_33 = arith.constant 0 : index
      %c128 = arith.constant 128 : index
      %40 = vector.load %arg10[%c0_33, %c128] : memref<8x1152xbf16, #tpu.memory_space<vmem>>, vector<8x128xbf16>
      tpu.vector_store %arg10[%c0_33, %c128], %39 {strides = array<i32>} : memref<8x1152xbf16, #tpu.memory_space<vmem>>, vector<8x128xbf16>,
      %c2 = arith.constant 2 : index
      %c0_34 = arith.constant 0 : index
      %c0_35 = arith.constant 0 : index
      %41 = vector.load %arg2[%c2, %c0_34, %c0_35] : memref<9x8x32xbf16, #tpu.memory_space<vmem>>, vector<1x8x32xbf16>
      %42 = vector.shape_cast %41 : vector<1x8x32xbf16> to vector<8x32xbf16>
      %c0_36 = arith.constant 0 : index
      %c0_37 = arith.constant 0 : index
      %43 = vector.load %arg3[%c0_36, %c0_37] : memref<32x128xbf16, #tpu.memory_space<vmem>>, vector<32x128xbf16>
      %cst_38 = arith.constant dense<0.000000e+00> : vector<8x128xf32>
      %44 = tpu.matmul %42, %43, %cst_38 {dimension_numbers = #tpu.dot_dimension_numbers<[1], [0], [0], [1], [0, 0, 1, 1], [], []>} : vector<8x32xbf16>, vector<32x128xbf16>, vector<8x128xf32> -> vector<8x128xf32>
      %45 = arith.addf %44, %22 : vector<8x128xf32>
      %cst_39 = arith.constant 0.000000e+00 : f32
      %46 = vector.broadcast %cst_39 : f32 to vector<8x128xf32>
      %47 = arith.maximumf %45, %46 : vector<8x128xf32>
      %48 = arith.truncf %47 : vector<8x128xf32> to vector<8x128xbf16>
      %c0_40 = arith.constant 0 : index
      %c256 = arith.constant 256 : index
      %49 = vector.load %arg10[%c0_40, %c256] : memref<8x1152xbf16, #tpu.memory_space<vmem>>, vector<8x128xbf16>
      tpu.vector_store %arg10[%c0_40, %c256], %48 {strides = array<i32>} : memref<8x1152xbf16, #tpu.memory_space<vmem>>, vector<8x128xbf16>,
      %c3 = arith.constant 3 : index
      %c0_41 = arith.constant 0 : index
      %c0_42 = arith.constant 0 : index
      %50 = vector.load %arg2[%c3, %c0_41, %c0_42] : memref<9x8x32xbf16, #tpu.memory_space<vmem>>, vector<1x8x32xbf16>
      %51 = vector.shape_cast %50 : vector<1x8x32xbf16> to vector<8x32xbf16>
      %c0_43 = arith.constant 0 : index
      %c0_44 = arith.constant 0 : index
      %52 = vector.load %arg3[%c0_43, %c0_44] : memref<32x128xbf16, #tpu.memory_space<vmem>>, vector<32x128xbf16>
      %cst_45 = arith.constant dense<0.000000e+00> : vector<8x128xf32>
      %53 = tpu.matmul %51, %52, %cst_45 {dimension_numbers = #tpu.dot_dimension_numbers<[1], [0], [0], [1], [0, 0, 1, 1], [], []>} : vector<8x32xbf16>, vector<32x128xbf16>, vector<8x128xf32> -> vector<8x128xf32>
      %54 = arith.addf %53, %22 : vector<8x128xf32>
      %cst_46 = arith.constant 0.000000e+00 : f32
      %55 = vector.broadcast %cst_46 : f32 to vector<8x128xf32>
      %56 = arith.maximumf %54, %55 : vector<8x128xf32>
      %57 = arith.truncf %56 : vector<8x128xf32> to vector<8x128xbf16>
      %c0_47 = arith.constant 0 : index
      %c384 = arith.constant 384 : index
      %58 = vector.load %arg10[%c0_47, %c384] : memref<8x1152xbf16, #tpu.memory_space<vmem>>, vector<8x128xbf16>
      tpu.vector_store %arg10[%c0_47, %c384], %57 {strides = array<i32>} : memref<8x1152xbf16, #tpu.memory_space<vmem>>, vector<8x128xbf16>,
      %c4 = arith.constant 4 : index
      %c0_48 = arith.constant 0 : index
      %c0_49 = arith.constant 0 : index
      %59 = vector.load %arg2[%c4, %c0_48, %c0_49] : memref<9x8x32xbf16, #tpu.memory_space<vmem>>, vector<1x8x32xbf16>
      %60 = vector.shape_cast %59 : vector<1x8x32xbf16> to vector<8x32xbf16>
      %c0_50 = arith.constant 0 : index
      %c0_51 = arith.constant 0 : index
      %61 = vector.load %arg3[%c0_50, %c0_51] : memref<32x128xbf16, #tpu.memory_space<vmem>>, vector<32x128xbf16>
      %cst_52 = arith.constant dense<0.000000e+00> : vector<8x128xf32>
      %62 = tpu.matmul %60, %61, %cst_52 {dimension_numbers = #tpu.dot_dimension_numbers<[1], [0], [0], [1], [0, 0, 1, 1], [], []>} : vector<8x32xbf16>, vector<32x128xbf16>, vector<8x128xf32> -> vector<8x128xf32>
      %63 = arith.addf %62, %22 : vector<8x128xf32>
      %cst_53 = arith.constant 0.000000e+00 : f32
      %64 = vector.broadcast %cst_53 : f32 to vector<8x128xf32>
      %65 = arith.maximumf %63, %64 : vector<8x128xf32>
      %66 = arith.truncf %65 : vector<8x128xf32> to vector<8x128xbf16>
      %c0_54 = arith.constant 0 : index
      %c512 = arith.constant 512 : index
      %67 = vector.load %arg10[%c0_54, %c512] : memref<8x1152xbf16, #tpu.memory_space<vmem>>, vector<8x128xbf16>
      tpu.vector_store %arg10[%c0_54, %c512], %66 {strides = array<i32>} : memref<8x1152xbf16, #tpu.memory_space<vmem>>, vector<8x128xbf16>,
      %c5 = arith.constant 5 : index
      %c0_55 = arith.constant 0 : index
      %c0_56 = arith.constant 0 : index
      %68 = vector.load %arg2[%c5, %c0_55, %c0_56] : memref<9x8x32xbf16, #tpu.memory_space<vmem>>, vector<1x8x32xbf16>
      %69 = vector.shape_cast %68 : vector<1x8x32xbf16> to vector<8x32xbf16>
      %c0_57 = arith.constant 0 : index
      %c0_58 = arith.constant 0 : index
      %70 = vector.load %arg3[%c0_57, %c0_58] : memref<32x128xbf16, #tpu.memory_space<vmem>>, vector<32x128xbf16>
      %cst_59 = arith.constant dense<0.000000e+00> : vector<8x128xf32>
      %71 = tpu.matmul %69, %70, %cst_59 {dimension_numbers = #tpu.dot_dimension_numbers<[1], [0], [0], [1], [0, 0, 1, 1], [], []>} : vector<8x32xbf16>, vector<32x128xbf16>, vector<8x128xf32> -> vector<8x128xf32>
      %72 = arith.addf %71, %22 : vector<8x128xf32>
      %cst_60 = arith.constant 0.000000e+00 : f32
      %73 = vector.broadcast %cst_60 : f32 to vector<8x128xf32>
      %74 = arith.maximumf %72, %73 : vector<8x128xf32>
      %75 = arith.truncf %74 : vector<8x128xf32> to vector<8x128xbf16>
      %c0_61 = arith.constant 0 : index
      %c640 = arith.constant 640 : index
      %76 = vector.load %arg10[%c0_61, %c640] : memref<8x1152xbf16, #tpu.memory_space<vmem>>, vector<8x128xbf16>
      tpu.vector_store %arg10[%c0_61, %c640], %75 {strides = array<i32>} : memref<8x1152xbf16, #tpu.memory_space<vmem>>, vector<8x128xbf16>,
      %c6 = arith.constant 6 : index
      %c0_62 = arith.constant 0 : index
      %c0_63 = arith.constant 0 : index
      %77 = vector.load %arg2[%c6, %c0_62, %c0_63] : memref<9x8x32xbf16, #tpu.memory_space<vmem>>, vector<1x8x32xbf16>
      %78 = vector.shape_cast %77 : vector<1x8x32xbf16> to vector<8x32xbf16>
      %c0_64 = arith.constant 0 : index
      %c0_65 = arith.constant 0 : index
      %79 = vector.load %arg3[%c0_64, %c0_65] : memref<32x128xbf16, #tpu.memory_space<vmem>>, vector<32x128xbf16>
      %cst_66 = arith.constant dense<0.000000e+00> : vector<8x128xf32>
      %80 = tpu.matmul %78, %79, %cst_66 {dimension_numbers = #tpu.dot_dimension_numbers<[1], [0], [0], [1], [0, 0, 1, 1], [], []>} : vector<8x32xbf16>, vector<32x128xbf16>, vector<8x128xf32> -> vector<8x128xf32>
      %81 = arith.addf %80, %22 : vector<8x128xf32>
      %cst_67 = arith.constant 0.000000e+00 : f32
      %82 = vector.broadcast %cst_67 : f32 to vector<8x128xf32>
      %83 = arith.maximumf %81, %82 : vector<8x128xf32>
      %84 = arith.truncf %83 : vector<8x128xf32> to vector<8x128xbf16>
      %c0_68 = arith.constant 0 : index
      %c768 = arith.constant 768 : index
      %85 = vector.load %arg10[%c0_68, %c768] : memref<8x1152xbf16, #tpu.memory_space<vmem>>, vector<8x128xbf16>
      tpu.vector_store %arg10[%c0_68, %c768], %84 {strides = array<i32>} : memref<8x1152xbf16, #tpu.memory_space<vmem>>, vector<8x128xbf16>,
      %c7 = arith.constant 7 : index
      %c0_69 = arith.constant 0 : index
      %c0_70 = arith.constant 0 : index
      %86 = vector.load %arg2[%c7, %c0_69, %c0_70] : memref<9x8x32xbf16, #tpu.memory_space<vmem>>, vector<1x8x32xbf16>
      %87 = vector.shape_cast %86 : vector<1x8x32xbf16> to vector<8x32xbf16>
      %c0_71 = arith.constant 0 : index
      %c0_72 = arith.constant 0 : index
      %88 = vector.load %arg3[%c0_71, %c0_72] : memref<32x128xbf16, #tpu.memory_space<vmem>>, vector<32x128xbf16>
      %cst_73 = arith.constant dense<0.000000e+00> : vector<8x128xf32>
      %89 = tpu.matmul %87, %88, %cst_73 {dimension_numbers = #tpu.dot_dimension_numbers<[1], [0], [0], [1], [0, 0, 1, 1], [], []>} : vector<8x32xbf16>, vector<32x128xbf16>, vector<8x128xf32> -> vector<8x128xf32>
      %90 = arith.addf %89, %22 : vector<8x128xf32>
      %cst_74 = arith.constant 0.000000e+00 : f32
      %91 = vector.broadcast %cst_74 : f32 to vector<8x128xf32>
      %92 = arith.maximumf %90, %91 : vector<8x128xf32>
      %93 = arith.truncf %92 : vector<8x128xf32> to vector<8x128xbf16>
      %c0_75 = arith.constant 0 : index
      %c896 = arith.constant 896 : index
      %94 = vector.load %arg10[%c0_75, %c896] : memref<8x1152xbf16, #tpu.memory_space<vmem>>, vector<8x128xbf16>
      tpu.vector_store %arg10[%c0_75, %c896], %93 {strides = array<i32>} : memref<8x1152xbf16, #tpu.memory_space<vmem>>, vector<8x128xbf16>,
      %c8 = arith.constant 8 : index
      %c0_76 = arith.constant 0 : index
      %c0_77 = arith.constant 0 : index
      %95 = vector.load %arg2[%c8, %c0_76, %c0_77] : memref<9x8x32xbf16, #tpu.memory_space<vmem>>, vector<1x8x32xbf16>
      %96 = vector.shape_cast %95 : vector<1x8x32xbf16> to vector<8x32xbf16>
      %c0_78 = arith.constant 0 : index
      %c0_79 = arith.constant 0 : index
      %97 = vector.load %arg3[%c0_78, %c0_79] : memref<32x128xbf16, #tpu.memory_space<vmem>>, vector<32x128xbf16>
      %cst_80 = arith.constant dense<0.000000e+00> : vector<8x128xf32>
      %98 = tpu.matmul %96, %97, %cst_80 {dimension_numbers = #tpu.dot_dimension_numbers<[1], [0], [0], [1], [0, 0, 1, 1], [], []>} : vector<8x32xbf16>, vector<32x128xbf16>, vector<8x128xf32> -> vector<8x128xf32>
      %99 = arith.addf %98, %22 : vector<8x128xf32>
      %cst_81 = arith.constant 0.000000e+00 : f32
      %100 = vector.broadcast %cst_81 : f32 to vector<8x128xf32>
      %101 = arith.maximumf %99, %100 : vector<8x128xf32>
      %102 = arith.truncf %101 : vector<8x128xf32> to vector<8x128xbf16>
      %c0_82 = arith.constant 0 : index
      %c1024 = arith.constant 1024 : index
      %103 = vector.load %arg10[%c0_82, %c1024] : memref<8x1152xbf16, #tpu.memory_space<vmem>>, vector<8x128xbf16>
      tpu.vector_store %arg10[%c0_82, %c1024], %102 {strides = array<i32>} : memref<8x1152xbf16, #tpu.memory_space<vmem>>, vector<8x128xbf16>,
      %c0_83 = arith.constant 0 : index
      %c0_84 = arith.constant 0 : index
      %104 = vector.load %arg8[%c0_83, %c0_84] : memref<1x128xf32, #tpu.memory_space<vmem>>, vector<1x128xf32>
      %105 = vector.shape_cast %104 : vector<1x128xf32> to vector<1x128xf32>
      %106 = vector.broadcast %105 : vector<1x128xf32> to vector<8x128xf32>
      %c0_85 = arith.constant 0 : index
      %c0_86 = arith.constant 0 : index
      %107 = vector.load %arg11[%c0_85, %c0_86] : memref<8x128xf32, #tpu.memory_space<vmem>>, vector<8x128xf32>
      tpu.vector_store %arg11[%c0_85, %c0_86], %106 {strides = array<i32>} : memref<8x128xf32, #tpu.memory_space<vmem>>, vector<8x128xf32>,
    } else {
    }
    %c0 = arith.constant 0 : index
    %c0_1 = arith.constant 0 : index
    %3 = vector.load %arg10[%c0, %c0_1] : memref<8x1152xbf16, #tpu.memory_space<vmem>>, vector<8x1152xbf16>
    %c0_2 = arith.constant 0 : index
    %c0_3 = arith.constant 0 : index
    %4 = vector.load %arg5[%c0_2, %c0_3] : memref<1152x128xbf16, #tpu.memory_space<vmem>>, vector<1152x128xbf16>
    %cst = arith.constant dense<0.000000e+00> : vector<8x128xf32>
    %5 = tpu.matmul %3, %4, %cst {dimension_numbers = #tpu.dot_dimension_numbers<[1], [0], [0], [1], [0, 0, 1, 1], [], []>} : vector<8x1152xbf16>, vector<1152x128xbf16>, vector<8x128xf32> -> vector<8x128xf32>
    %c0_4 = arith.constant 0 : index
    %c0_5 = arith.constant 0 : index
    %6 = vector.load %arg6[%c0_4, %c0_5] : memref<1x128xf32, #tpu.memory_space<vmem>>, vector<1x128xf32>
    %7 = vector.broadcast %6 : vector<1x128xf32> to vector<8x128xf32>
    %8 = arith.addf %5, %7 : vector<8x128xf32>
    %cst_6 = arith.constant 0.000000e+00 : f32
    %9 = vector.broadcast %cst_6 : f32 to vector<8x128xf32>
    %10 = arith.maximumf %8, %9 : vector<8x128xf32>
    %11 = arith.truncf %10 : vector<8x128xf32> to vector<8x128xbf16>
    %c0_7 = arith.constant 0 : index
    %c0_8 = arith.constant 0 : index
    %12 = vector.load %arg11[%c0_7, %c0_8] : memref<8x128xf32, #tpu.memory_space<vmem>>, vector<8x128xf32>
    %c0_9 = arith.constant 0 : index
    %c0_10 = arith.constant 0 : index
    %13 = vector.load %arg7[%c0_9, %c0_10] : memref<128x128xbf16, #tpu.memory_space<vmem>>, vector<128x128xbf16>
    %cst_11 = arith.constant dense<0.000000e+00> : vector<8x128xf32>
    %14 = tpu.matmul %11, %13, %cst_11 {dimension_numbers = #tpu.dot_dimension_numbers<[1], [0], [0], [1], [0, 0, 1, 1], [], []>} : vector<8x128xbf16>, vector<128x128xbf16>, vector<8x128xf32> -> vector<8x128xf32>
    %15 = arith.addf %12, %14 : vector<8x128xf32>
    %c0_12 = arith.constant 0 : index
    %c0_13 = arith.constant 0 : index
    %16 = vector.load %arg11[%c0_12, %c0_13] : memref<8x128xf32, #tpu.memory_space<vmem>>, vector<8x128xf32>
    tpu.vector_store %arg11[%c0_12, %c0_13], %15 {strides = array<i32>} : memref<8x128xf32, #tpu.memory_space<vmem>>, vector<8x128xf32>,
    %c0_i32_14 = arith.constant 0 : i32
    %17 = arith.cmpi eq, %arg1, %c0_i32_14 : i32
    %18 = arith.extui %17 : i1 to i32
    %c0_i32_15 = arith.constant 0 : i32
    %19 = arith.cmpi ne, %18, %c0_i32_15 : i32
    scf.if %19 {
      %c0_16 = arith.constant 0 : index
      %c0_17 = arith.constant 0 : index
      %20 = vector.load %arg11[%c0_16, %c0_17] : memref<8x128xf32, #tpu.memory_space<vmem>>, vector<8x128xf32>
      %c0_18 = arith.constant 0 : index
      %c0_19 = arith.constant 0 : index
      %21 = vector.load %arg9[%c0_18, %c0_19] : memref<8x128xf32, #tpu.memory_space<vmem>>, vector<8x128xf32>
      tpu.vector_store %arg9[%c0_18, %c0_19], %20 {strides = array<i32>} : memref<8x128xf32, #tpu.memory_space<vmem>>, vector<8x128xf32>,
    } else {
    }
    return
  }
  func.func @transform_0(%arg0: i32, %arg1: i32) -> (i32, i32, i32) {
    %c0_i32 = arith.constant 0 : i32
    %c0_i32_0 = arith.constant 0 : i32
    %c0_i32_1 = arith.constant 0 : i32
    return %c0_i32, %arg0, %c0_i32_0 : i32, i32, i32
  }
  func.func @transform_1(%arg0: i32, %arg1: i32) -> (i32, i32) {
    %c0_i32 = arith.constant 0 : i32
    %c0_i32_0 = arith.constant 0 : i32
    %c0_i32_1 = arith.constant 0 : i32
    return %c0_i32, %c0_i32_0 : i32, i32
  }
  func.func @transform_2(%arg0: i32, %arg1: i32) -> (i32, i32) {
    %c0_i32 = arith.constant 0 : i32
    %c0_i32_0 = arith.constant 0 : i32
    %c0_i32_1 = arith.constant 0 : i32
    return %c0_i32, %c0_i32_0 : i32, i32
  }
  func.func @transform_3(%arg0: i32, %arg1: i32) -> (i32, i32) {
    %c0_i32 = arith.constant 0 : i32
    %c0_i32_0 = arith.constant 0 : i32
    return %c0_i32, %arg1 : i32, i32
  }
  func.func @transform_4(%arg0: i32, %arg1: i32) -> (i32, i32) {
    %c0_i32 = arith.constant 0 : i32
    %c0_i32_0 = arith.constant 0 : i32
    return %c0_i32, %arg1 : i32, i32
  }
  func.func @transform_5(%arg0: i32, %arg1: i32) -> (i32, i32) {
    %c0_i32 = arith.constant 0 : i32
    %c0_i32_0 = arith.constant 0 : i32
    return %arg1, %c0_i32 : i32, i32
  }
  func.func @transform_6(%arg0: i32, %arg1: i32) -> (i32, i32) {
    %c0_i32 = arith.constant 0 : i32
    %c0_i32_0 = arith.constant 0 : i32
    %c0_i32_1 = arith.constant 0 : i32
    return %c0_i32, %c0_i32_0 : i32, i32
  }
  func.func @transform_7(%arg0: i32, %arg1: i32) -> (i32, i32) {
    %c0_i32 = arith.constant 0 : i32
    %c0_i32_0 = arith.constant 0 : i32
    return %arg0, %c0_i32 : i32, i32
  }
}

</mosaic_0001>

<bundles_post_ra>
// kernel: jig_head_forward.1
= control target key start
LH: loop header
LB: loop body
LE: loop exit
PB: predicated region body
PF: predicated region fallthrough
CT: control target
= control target key end

     0   :  { %v2041_v0 = vmov 0.0   ;;  %vm2042_vm0 = vmmov 0   ;;  %vm55_vm1 = vcmask 261120   ;;  %s2492_s1 = inlined_call_operand.vmem [shape: bf16[32,128], index: 1, kind: input, shape index: {}]   ;;  %s2493_s0 = inlined_call_operand.vmem [shape: bf16[9,8,32], index: 0, kind: input, shape index: {}]   ;;  %s2494_s3 = inlined_call_operand.vmem [shape: bf16[1152,128], index: 3, kind: input, shape index: {}]   ;;  %s2495_s2 = inlined_call_operand.vmem [shape: f32[1,128], index: 2, kind: input, shape index: {}]   ;;  %s2496_s5 = inlined_call_operand.vmem [shape: bf16[128,128], index: 5, kind: input, shape index: {}]   ;;  %s2497_s4 = inlined_call_operand.vmem [shape: f32[1,128], index: 4, kind: input, shape index: {}]   ;;  %s2498_s6 = inlined_call_operand.vmem [shape: f32[1,128], index: 6, kind: input, shape index: {}]   ;;  %s2499_s7 = inlined_call_operand.vmem [shape: f32[8,128], index: 7, kind: output, shape index: {}]  }
   0x1   :  { %1820 = vmatprep.subr.bf16.mxu0 %v2041_v0  ;;  %1828 = vmatprep.subr.bf16.mxu1 %v2041_v0  ;;  %v1934_v1 = vld [vmem:[%s2492_s1 + $0x8] sm:$0xff]   ;;  %v1936_v3 = vld [vmem:[%s2492_s1] sm:$0xff]   ;;  %v1576_v17 = vld [vmem:[%s2493_s0 + $0x10] sm:$0xf] }
   0x2   :  { %v1935_v2 = vld [vmem:[%s2492_s1 + $0x8] sm:$0xff]   ;;  %1824 = vmatprep.mubr.msk.bf16.mxu0 %vm2042_vm0, %v2041_v0  ;;  %1832 = vmatprep.mubr.msk.bf16.mxu1 %vm2042_vm0, %v2041_v0  ;;  %v1937_v4 = vld [vmem:[%s2492_s1] sm:$0xff]   ;;  %v1580_v18 = vld [vmem:[%s2493_s0 + $0x14] sm:$0xf] }
   0x3   :  { %1821 = vmatpush3.bf16.msra.mxu0 %v1934_v1  ;;  %1829 = vmatpush3.bf16.msra.mxu1 %v1935_v2  ;;  %v38_v5 = vld [vmem:[%s2493_s0] sm:$0xf]  ;;  %v1564_v6 = vld [vmem:[%s2493_s0 + $0x4] sm:$0xf]  ;;  %v1938_v7 = vld [vmem:[%s2492_s1 + $0x8] sm:$0xff]  }
   0x4   :  { %1822 = vmatprep.subr.bf16.mxu0 %v2041_v0  ;;  %1830 = vmatprep.subr.bf16.mxu1 %v2041_v0  ;;  %v1939_v8 = vld [vmem:[%s2492_s1 + $0x8] sm:$0xff]   ;;  %v1940_v9 = vld [vmem:[%s2492_s1] sm:$0xff]   ;;  %v1584_v23 = vld [vmem:[%s2493_s0 + $0x18] sm:$0xf] }
   0x5   :  { %v1941_v10 = vld [vmem:[%s2492_s1] sm:$0xff]   ;;  %v1568_v11 = vld [vmem:[%s2493_s0 + $0x8] sm:$0xf]  ;;  %v1572_v12 = vld [vmem:[%s2493_s0 + $0xc] sm:$0xf] }
   0x6   :  { %v1942_v13 = vld [vmem:[%s2492_s1 + $0x8] sm:$0xff]   ;;  %v1944_v15 = vld [vmem:[%s2492_s1] sm:$0xff]   ;;  %v1952_v24 = vld [vmem:[%s2494_s3 + $0x78] sm:$0xff]  }
   0x7   :  { %1823 = vmatpush3.bf16.msra.mxu0 %v1936_v3  ;;  %1831 = vmatpush3.bf16.msra.mxu1 %v1937_v4  ;;  %v1943_v14 = vld [vmem:[%s2492_s1 + $0x8] sm:$0xff]   ;;  %v1945_v16 = vld [vmem:[%s2492_s1] sm:$0xff]   ;;  %v1588_v25 = vld [vmem:[%s2493_s0 + $0x1c] sm:$0xf] }
   0x8   :  { %1836 = vmatprep.subr.bf16.mxu0 %v2041_v0  ;;  %1844 = vmatprep.subr.bf16.mxu1 %v2041_v0  ;;  %v1946_v19 = vld [vmem:[%s2492_s1 + $0x8] sm:$0xff]   ;;  %v1948_v21 = vld [vmem:[%s2492_s1] sm:$0xff]   ;;  %v1953_v27 = vld [vmem:[%s2494_s3 + $0x38] sm:$0xff]  }
   0x9   :  { %v1947_v20 = vld [vmem:[%s2492_s1 + $0x8] sm:$0xff]   ;;  %v1949_v22 = vld [vmem:[%s2492_s1] sm:$0xff]   ;;  %v1954_v29 = vld [vmem:[%s2494_s3 + $0x70] sm:$0xff]  }
   0xa   :  { %1825 = vmatmul.mubr.msk.bf16.vlgmr.msra.gmra.mxu0 %vm55_vm1, %v38_v5  ;;  %1833 = vmatmul.mubr.msk.bf16.vlgmr.msra.gmra.mxu1 %vm55_vm1, %v1564_v6  ;;  %v1950_v26 = vld [vmem:[%s2492_s1 + $0x8] sm:$0xff]   ;;  %v1951_v28 = vld [vmem:[%s2492_s1] sm:$0xff]   ;;  %v1957_v30 = vld [vmem:[%s2494_s3 + $0xf8] sm:$0xff]  }
   0xb   :  { %1837 = vmatpush3.bf16.msra.mxu0 %v1938_v7  ;;  %1845 = vmatpush3.bf16.msra.mxu1 %v1939_v8  ;;  %v1955_v31 = vld [vmem:[%s2494_s3 + $0x30] sm:$0xff]   ;;  %v1956_v32 = vld [vmem:[%s2494_s3 + $0x68] sm:$0xff]   ;;  %v1592_v33 = vld [vmem:[%s2493_s0 + $0x20] sm:$0xf] }
   0xc   :  { %1838 = vmatprep.subr.bf16.mxu0 %v2041_v0  ;;  %1846 = vmatprep.subr.bf16.mxu1 %v2041_v0  ;;  %v1959_v34 = vld [vmem:[%s2494_s3 + $0xb8] sm:$0xff]   ;;  %v1961_v35 = vld [vmem:[%s2494_s3 + $0xf0] sm:$0xff]   ;;  %v1958_v36 = vld [vmem:[%s2494_s3 + $0x28] sm:$0xff]  }
   0xd   :  { %1840 = vmatprep.mubr.msk.bf16.mxu0 %vm2042_vm0, %v2041_v0  ;;  %1848 = vmatprep.mubr.msk.bf16.mxu1 %vm2042_vm0, %v2041_v0  ;;  %v1960_v37 = vld [vmem:[%s2494_s3 + $0x60] sm:$0xff]   ;;  %v1963_v38 = vld [vmem:[%s2494_s3 + $0xb0] sm:$0xff]   ;;  %v1964_v40 = vld [vmem:[%s2494_s3 + $0x58] sm:$0xff]  }
   0xe   :  { %v1962_v39 = vld [vmem:[%s2494_s3 + $0x20] sm:$0xff]   ;;  %v1965_v41 = vld [vmem:[%s2494_s3 + $0xe8] sm:$0xff]   ;;  %v1966_v42 = vld [vmem:[%s2494_s3 + $0x18] sm:$0xff]  }
   0xf   :  { %1839 = vmatpush3.bf16.msra.mxu0 %v1940_v9  ;;  %1847 = vmatpush3.bf16.msra.mxu1 %v1941_v10  ;;  %v1967_v43 = vld [vmem:[%s2494_s3 + $0xa8] sm:$0xff]   ;;  %v1968_v44 = vld [vmem:[%s2494_s3 + $0x50] sm:$0xff]   ;;  %v1969_v45 = vld [vmem:[%s2494_s3 + $0xe0] sm:$0xff]  }
  0x10   :  { %1852 = vmatprep.subr.bf16.mxu0 %v2041_v0  ;;  %1860 = vmatprep.subr.bf16.mxu1 %v2041_v0  ;;  %v1970_v46 = vld [vmem:[%s2494_s3 + $0x10] sm:$0xff]   ;;  %v1971_v47 = vld [vmem:[%s2494_s3 + $0xa0] sm:$0xff]   ;;  %v1972_v48 = vld [vmem:[%s2494_s3 + $0x48] sm:$0xff]  }
  0x11   :  { %v1973_v49 = vld [vmem:[%s2494_s3 + $0xd8] sm:$0xff]   ;;  %v1974_v50 = vld [vmem:[%s2494_s3 + $0x8] sm:$0xff]   ;;  %v1976_v52 = vld [vmem:[%s2494_s3 + $0x40] sm:$0xff]  }
  0x12   :  { %1841 = vmatmul.mubr.msk.bf16.vlgmr.msra.gmra.mxu0 %vm55_vm1, %v1568_v11  ;;  %1849 = vmatmul.mubr.msk.bf16.vlgmr.msra.gmra.mxu1 %vm55_vm1, %v1572_v12  ;;  %v1975_v51 = vld [vmem:[%s2494_s3 + $0x98] sm:$0xff]   ;;  %v1977_v53 = vld [vmem:[%s2494_s3 + $0xd0] sm:$0xff]   ;;  %v1978_v54 = vld [vmem:[%s2494_s3] sm:$0xff]  }
  0x13   :  { %1853 = vmatpush3.bf16.msra.mxu0 %v1942_v13  ;;  %1861 = vmatpush3.bf16.msra.mxu1 %v1943_v14  ;;  %v1979_v55 = vld [vmem:[%s2494_s3 + $0x90] sm:$0xff]   ;;  %v1982_v56 = vld [vmem:[%s2494_s3 + $0xc8] sm:$0xff]   ;;  %v1983_v57 = vld [vmem:[%s2494_s3 + $0x178] sm:$0xff]  }
  0x14   :  { %1854 = vmatprep.subr.bf16.mxu0 %v2041_v0  ;;  %1862 = vmatprep.subr.bf16.mxu1 %v2041_v0  ;;  %v1984_v58 = vld [vmem:[%s2494_s3 + $0x88] sm:$0xff]   ;;  %v1986_v59 = vld [vmem:[%s2494_s3 + $0xc0] sm:$0xff]   ;;  %v1993_v61 = vld [vmem:[%s2494_s3 + $0x1f8] sm:$0xff]  }
  0x15   :  { %1856 = vmatprep.mubr.msk.bf16.mxu0 %vm2042_vm0, %v2041_v0  ;;  %1864 = vmatprep.mubr.msk.bf16.mxu1 %vm2042_vm0, %v2041_v0  ;;  %v1988_v60 = vld [vmem:[%s2494_s3 + $0x80] sm:$0xff]  }
  0x16   :  { %v2314_v62 = vld [vmem:[%s2495_s2] ss:$0 sm:$0xff] }
  0x17   :  { %1855 = vmatpush3.bf16.msra.mxu0 %v1944_v15  ;;  %1863 = vmatpush3.bf16.msra.mxu1 %v1945_v16 }
  0x18   :  { %1868 = vmatprep.subr.bf16.mxu0 %v2041_v0  ;;  %1876 = vmatprep.subr.bf16.mxu1 %v2041_v0 }
  0x1a   :  { %1857 = vmatmul.mubr.msk.bf16.vlgmr.msra.gmra.mxu0 %vm55_vm1, %v1576_v17  ;;  %1865 = vmatmul.mubr.msk.bf16.vlgmr.msra.gmra.mxu1 %vm55_vm1, %v1580_v18 }
  0x1b   :  { %1869 = vmatpush3.bf16.msra.mxu0 %v1946_v19  ;;  %1877 = vmatpush3.bf16.msra.mxu1 %v1947_v20 }
  0x1c   :  { %1870 = vmatprep.subr.bf16.mxu0 %v2041_v0  ;;  %1878 = vmatprep.subr.bf16.mxu1 %v2041_v0 }
  0x1d   :  { %1872 = vmatprep.mubr.msk.bf16.mxu0 %vm2042_vm0, %v2041_v0  ;;  %1880 = vmatprep.mubr.msk.bf16.mxu1 %vm2042_vm0, %v2041_v0 }
  0x1f   :  { %1871 = vmatpush3.bf16.msra.mxu0 %v1948_v21  ;;  %1879 = vmatpush3.bf16.msra.mxu1 %v1949_v22 }
  0x20   :  { %1884 = vmatprep.subr.bf16.mxu0 %v2041_v0  ;;  %1714 = vmatprep.subr.bf16.mxu1 %v1952_v24 }
  0x22   :  { %1873 = vmatmul.mubr.msk.bf16.vlgmr.msra.gmra.mxu0 %vm55_vm1, %v1584_v23  ;;  %1881 = vmatmul.mubr.msk.bf16.vlgmr.msra.gmra.mxu1 %vm55_vm1, %v1588_v25 }
  0x23   :  { %1885 = vmatpush3.bf16.msra.mxu0 %v1950_v26  ;;  %1888 = vmatprep.mubr.msk.bf16.mxu0 %vm2042_vm0, %v2041_v0 }
  0x24   :  { %1886 = vmatprep.subr.bf16.mxu0 %v2041_v0  ;;  %1715 = vmatpush3.bf16.msra.mxu1 %v1953_v27 }
  0x25   :  { %1716 = vmatprep.subr.bf16.mxu1 %v1954_v29 }
  0x27   :  { %1887 = vmatpush3.bf16.msra.mxu0 %v1951_v28 }
  0x28   :  { %1736 = vmatprep.subr.bf16.mxu0 %v1957_v30  ;;  %1717 = vmatpush3.bf16.msra.mxu1 %v1955_v31  ;;  %v1985_v31 = vld [vmem:[%s2494_s3 + $0x138] sm:$0xff]  }
  0x29   :  { %1718 = vmatprep.subr.bf16.mxu1 %v1956_v32 }
  0x2a   :  { %1889 = vmatmul.mubr.msk.bf16.vlgmr.msra.gmra.mxu0 %vm55_vm1, %v1592_v33  ;;  %v1987_v33 = vld [vmem:[%s2494_s3 + $0x170] sm:$0xff]  }
  0x2b   :  { %1737 = vmatpush3.bf16.msra.mxu0 %v1959_v34 }
  0x2c   :  { %1738 = vmatprep.subr.bf16.mxu0 %v1961_v35  ;;  %1719 = vmatpush3.bf16.msra.mxu1 %v1958_v36 }
  0x2d   :  { %1720 = vmatprep.subr.bf16.mxu1 %v1960_v37 }
  0x2f   :  { %1739 = vmatpush3.bf16.msra.mxu0 %v1963_v38 }
  0x30   :  { %1721 = vmatpush3.bf16.msra.mxu1 %v1962_v39  ;;  %1740 = vmatprep.subr.bf16.mxu0 %v1965_v41 }
  0x31   :  { %1722 = vmatprep.subr.bf16.mxu1 %v1964_v40  ;;  %v1989_v40 = vld [vmem:[%s2494_s3 + $0x130] sm:$0xff]  }
  0x33   :  { %1741 = vmatpush3.bf16.msra.mxu0 %v1967_v43  ;;  %v1992_v43 = vld [vmem:[%s2494_s3 + $0x168] sm:$0xff]  }
  0x34   :  { %1723 = vmatpush3.bf16.msra.mxu1 %v1966_v42  ;;  %1742 = vmatprep.subr.bf16.mxu0 %v1969_v45 }
  0x35   :  { %1724 = vmatprep.subr.bf16.mxu1 %v1968_v44 }
  0x37   :  { %1743 = vmatpush3.bf16.msra.mxu0 %v1971_v47 }
  0x38   :  { %1725 = vmatpush3.bf16.msra.mxu1 %v1970_v46  ;;  %1744 = vmatprep.subr.bf16.mxu0 %v1973_v49 }
  0x39   :  { %1726 = vmatprep.subr.bf16.mxu1 %v1972_v48 }
  0x3b   :  { %1745 = vmatpush3.bf16.msra.mxu0 %v1975_v51 }
  0x3c   :  { %1727 = vmatpush3.bf16.msra.mxu1 %v1974_v50  ;;  %1746 = vmatprep.subr.bf16.mxu0 %v1977_v53  ;;  %v1995_v53 = vld [vmem:[%s2494_s3 + $0x1b8] sm:$0xff]  }
  0x3d   :  { %1728 = vmatprep.subr.bf16.mxu1 %v1976_v52  ;;  %v1994_v52 = vld [vmem:[%s2494_s3 + $0x128] sm:$0xff]  }
  0x3f   :  { %1747 = vmatpush3.bf16.msra.mxu0 %v1979_v55  ;;  %v1996_v55 = vld [vmem:[%s2494_s3 + $0x160] sm:$0xff]  }
  0x40   :  { %1729 = vmatpush3.bf16.msra.mxu1 %v1978_v54  ;;  %1748 = vmatprep.subr.bf16.mxu0 %v1982_v56  ;;  %v1997_v56 = vld [vmem:[%s2494_s3 + $0x1f0] sm:$0xff]  }
  0x41   :  { %1758 = vmatprep.subr.bf16.mxu1 %v1983_v57 }
  0x43   :  { %1749 = vmatpush3.bf16.msra.mxu0 %v1984_v58 }
  0x44   :  { %1750 = vmatprep.subr.bf16.mxu0 %v1986_v59 }
  0x47   :  { %1751 = vmatpush3.bf16.msra.mxu0 %v1988_v60 }
  0x48   :  { %1780 = vmatprep.subr.bf16.mxu0 %v1993_v61 }
  0xca   :  { %v93_v63 = vpop.f32.mrf.mxu0  ;;  %v157_v2 = vpop.f32.mrf.mxu1 }
  0xcb   :  { %v94_v1 = vadd.f32 %v2314_v62, %v93_v63  ;;  %v158_v3 = vadd.f32 %v2314_v62, %v157_v2  ;;  %v1999_v2 = vld [vmem:[%s2494_s3 + $0x1b0] sm:$0xff]  }
  0xcc   :  { %v1826_v4 = vpop.f32.mrf.mxu0  ;;  %v1834_v6 = vpop.f32.mrf.mxu1 }
  0xcd   :  { %v99_v5 = vmax.f32 %v94_v1, 0.0  ;;  %v163_v7 = vmax.f32 %v158_v3, 0.0  ;;  %v1998_v1 = vld [vmem:[%s2494_s3 + $0x120] sm:$0xff]   ;;  %v2001_v6 = vld [vmem:[%s2494_s3 + $0x1e8] sm:$0xff]  }
  0xce   :  { %v96_v8 = vpop.f32.mrf.mxu0  ;;  %v160_v10 = vpop.f32.mrf.mxu1 }
  0xcf   :  { %v100_v9 = vpack.c.bf16 %v99_v5, %v99_v5  ;;  %v164_v11 = vpack.c.bf16 %v163_v7, %v163_v7  ;;  %v2000_v5 = vld [vmem:[%s2494_s3 + $0x158] sm:$0xff]  }
  0xd0   :  { %v1827_v12 = vpop.f32.mrf.mxu0  ;;  %v1835_v13 = vpop.f32.mrf.mxu1 }
  0xd1   :  { %101 = vst [vmem:[#allocation2] sm:$0xf] %v100_v9  ;;  %165 = vst [vmem:[#allocation2 + $0x4] sm:$0xf] %v164_v11  ;;  %v2002_v13 = vld [vmem:[%s2494_s3 + $0x118] sm:$0xff]  }
  0xd2   :  { %v221_v14 = vpop.f32.mrf.mxu0  ;;  %v285_v16 = vpop.f32.mrf.mxu1 }
  0xd3   :  { %v222_v15 = vadd.f32 %v2314_v62, %v221_v14  ;;  %v286_v17 = vadd.f32 %v2314_v62, %v285_v16  ;;  %v2003_v14 = vld [vmem:[%s2494_s3 + $0x1a8] sm:$0xff]  }
  0xd4   :  { %v1842_v18 = vpop.f32.mrf.mxu0  ;;  %v1850_v20 = vpop.f32.mrf.mxu1 }
  0xd5   :  { %v227_v19 = vmax.f32 %v222_v15, 0.0  ;;  %v291_v21 = vmax.f32 %v286_v17, 0.0  ;;  %v2004_v17 = vld [vmem:[%s2494_s3 + $0x150] sm:$0xff]   ;;  %v2005_v18 = vld [vmem:[%s2494_s3 + $0x1e0] sm:$0xff]  }
  0xd6   :  { %v224_v22 = vpop.f32.mrf.mxu0  ;;  %v288_v24 = vpop.f32.mrf.mxu1 }
  0xd7   :  { %v228_v23 = vpack.c.bf16 %v227_v19, %v227_v19  ;;  %v292_v25 = vpack.c.bf16 %v291_v21, %v291_v21  ;;  %v2006_v22 = vld [vmem:[%s2494_s3 + $0x110] sm:$0xff]  }
  0xd8   :  { %v1843_v26 = vpop.f32.mrf.mxu0  ;;  %v622_v27 = vld [vmem:[#allocation2] sm:$0xff]  ;;  %v1851_v28 = vpop.f32.mrf.mxu1 }
  0xd9   :  { %229 = vst [vmem:[#allocation2 + $0x8] sm:$0xf] %v228_v23  ;;  %293 = vst [vmem:[#allocation2 + $0xc] sm:$0xf] %v292_v25  ;;  %v1598_v29 = vcombine.low %v622_v27, %v622_v27  ;;  %v1599_v30 = vcombine.high %v622_v27, %v622_v27  ;;  %v2007_v23 = vld [vmem:[%s2494_s3 + $0x1a0] sm:$0xff]   ;;  %v2009_v25 = vld [vmem:[%s2494_s3 + $0x1d8] sm:$0xff]  }
  0xda   :  { %v349_v32 = vpop.f32.mrf.mxu0  ;;  %v413_v35 = vpop.f32.mrf.mxu1 }
  0xdb   :  { %v350_v34 = vadd.f32 %v2314_v62, %v349_v32  ;;  %1274 = vmatprep.mubr.bf16.mxu1 %v1599_v30  ;;  %v414_v36 = vadd.f32 %v2314_v62, %v413_v35  ;;  %v2011_v30 = vld [vmem:[%s2494_s3 + $0x198] sm:$0xff]   ;;  %v2012_v32 = vld [vmem:[%s2494_s3 + $0x140] sm:$0xff]   ;;  %v2015_v35 = vld [vmem:[%s2494_s3 + $0x190] sm:$0xff]  }
  0xdc   :  { %v1858_v37 = vpop.f32.mrf.mxu0  ;;  %1275 = vmatmul.mubr.bf16.vlgmr.msra.gmra.mxu1 %v1598_v29  ;;  %v1866_v39 = vpop.f32.mrf.mxu1  ;;  %v2010_v29 = vld [vmem:[%s2494_s3 + $0x108] sm:$0xff]  }
  0xdd   :  { %v355_v38 = vmax.f32 %v350_v34, 0.0  ;;  %1759 = vmatpush3.bf16.msra.mxu1 %v1985_v31  ;;  %v419_v41 = vmax.f32 %v414_v36, 0.0  ;;  %v2014_v34 = vld [vmem:[%s2494_s3 + $0x100] sm:$0xff]   ;;  %v2018_v36 = vld [vmem:[%s2494_s3 + $0x1c8] sm:$0xff]   ;;  %v2020_v39 = vld [vmem:[%s2494_s3 + $0x238] sm:$0xff]  }
  0xde   :  { %v352_v42 = vpop.f32.mrf.mxu0  ;;  %1760 = vmatprep.subr.bf16.mxu1 %v1987_v33  ;;  %v416_v45 = vpop.f32.mrf.mxu1  ;;  %v2013_v33 = vld [vmem:[%s2494_s3 + $0x1d0] sm:$0xff]  }
  0xdf   :  { %v356_v44 = vpack.c.bf16 %v355_v38, %v355_v38  ;;  %v420_v46 = vpack.c.bf16 %v419_v41, %v419_v41  ;;  %v2019_v38 = vld [vmem:[%s2494_s3 + $0x188] sm:$0xff]   ;;  %v2022_v41 = vld [vmem:[%s2494_s3 + $0x180] sm:$0xff]   ;;  %v2023_v42 = vld [vmem:[%s2494_s3 + $0x230] sm:$0xff]  }
  0xe0   :  { %v1859_v47 = vpop.f32.mrf.mxu0  ;;  %v623_v48 = vld [vmem:[#allocation2 + $0x8] sm:$0xff]  ;;  %v1867_v49 = vpop.f32.mrf.mxu1  ;;  %v2027_v45 = vld [vmem:[%s2494_s3 + $0x220] sm:$0xff]  }
  0xe1   :  { %357 = vst [vmem:[#allocation2 + $0x10] sm:$0xf] %v356_v44  ;;  %1761 = vmatpush3.bf16.msra.mxu1 %v1989_v40  ;;  %v1600_v50 = vcombine.low %v623_v48, %v623_v48  ;;  %v1601_v51 = vcombine.high %v623_v48, %v623_v48  ;;  %421 = vst [vmem:[#allocation2 + $0x14] sm:$0xf] %v420_v46  ;;  %v2021_v40 = vld [vmem:[%s2494_s3 + $0x1c0] sm:$0xff]   ;;  %v2026_v44 = vld [vmem:[%s2494_s3 + $0x228] sm:$0xff]  }
  0xe2   :  { %v477_v54 = vpop.f32.mrf.mxu0  ;;  %1762 = vmatprep.subr.bf16.mxu1 %v1992_v43  ;;  %v541_v58 = vpop.f32.mrf.mxu1  ;;  %v2028_v46 = vld [vmem:[%s2494_s3 + $0x218] sm:$0xff]   ;;  %v2029_v47 = vld [vmem:[%s2494_s3 + $0x210] sm:$0xff]   ;;  %v2030_v48 = vld [vmem:[%s2494_s3 + $0x208] sm:$0xff]  }
  0xe3   :  { %v478_v57 = vadd.f32 %v2314_v62, %v477_v54  ;;  %1314 = vmatprep.mubr.bf16.mxu0 %v1601_v51  ;;  %v542_v59 = vadd.f32 %v2314_v62, %v541_v58  ;;  %v2031_v49 = vld [vmem:[%s2494_s3 + $0x200] sm:$0xff]   ;;  %v2033_v51 = vld [vmem:[%s2496_s5 + $0x38] sm:$0xff]  }
  0xe4   :  { %v1874_v60 = vpop.f32.mrf.mxu0  ;;  %1315 = vmatmul.mubr.bf16.vlgmr.msra.gmra.mxu0 %v1600_v50  ;;  %v1882_v63 = vpop.f32.mrf.mxu1  ;;  %v2036_v54 = vld [vmem:[%s2496_s5 + $0x20] sm:$0xff]  }
  0xe5   :  { %v483_v61 = vmax.f32 %v478_v57, 0.0  ;;  %1763 = vmatpush3.bf16.msra.mxu1 %v1994_v52  ;;  %1781 = vmatpush3.bf16.msra.mxu0 %v1995_v53  ;;  %v547_v3 = vmax.f32 %v542_v59, 0.0  ;;  %v2034_v52 = vld [vmem:[%s2496_s5 + $0x30] sm:$0xff]   ;;  %v2035_v53 = vld [vmem:[%s2496_s5 + $0x28] sm:$0xff]   ;;  %v2040_v58 = vld [vmem:[%s2496_s5] sm:$0xff]  }
  0xe6   :  { %v480_v4 = vpop.f32.mrf.mxu0  ;;  %1764 = vmatprep.subr.bf16.mxu1 %v1996_v55  ;;  %1782 = vmatprep.subr.bf16.mxu0 %v1997_v56  ;;  %v544_v8 = vpop.f32.mrf.mxu1  ;;  %v2037_v55 = vld [vmem:[%s2496_s5 + $0x18] sm:$0xff]   ;;  %v2038_v56 = vld [vmem:[%s2496_s5 + $0x10] sm:$0xff]   ;;  %v2039_v57 = vld [vmem:[%s2496_s5 + $0x8] sm:$0xff]  }
  0xe7   :  { %v484_v7 = vpack.c.bf16 %v483_v61, %v483_v61  ;;  %v548_v9 = vpack.c.bf16 %v547_v3, %v547_v3 }
  0xe8   :  { %v1875_v10 = vpop.f32.mrf.mxu0  ;;  %v624_v11 = vld [vmem:[#allocation2 + $0x10] sm:$0xff]  ;;  %v1883_v12 = vpop.f32.mrf.mxu1 }
  0xe9   :  { %485 = vst [vmem:[#allocation2 + $0x18] sm:$0xf] %v484_v7  ;;  %1765 = vmatpush3.bf16.msra.mxu1 %v1998_v1  ;;  %1783 = vmatpush3.bf16.msra.mxu0 %v1999_v2  ;;  %549 = vst [vmem:[#allocation2 + $0x1c] sm:$0xf] %v548_v9  ;;  %v1603_v15 = vcombine.high %v624_v11, %v624_v11  ;;  %v1602_v37 = vcombine.low %v624_v11, %v624_v11 }
  0xea   :  { %v605_v16 = vpop.f32.mrf.mxu0  ;;  %1766 = vmatprep.subr.bf16.mxu1 %v2000_v5  ;;  %1784 = vmatprep.subr.bf16.mxu0 %v2001_v6 }
  0xeb   :  { %v606_v19 = vadd.f32 %v2314_v62, %v605_v16  ;;  %1354 = vmatprep.mubr.bf16.mxu1 %v1603_v15  ;;  %v2008_v62 = vld [vmem:[%s2494_s3 + $0x148] sm:$0xff]  }
  0xec   :  { %v1890_v20 = vpop.f32.mrf.mxu0 }
  0xed   :  { %v611_v21 = vmax.f32 %v606_v19, 0.0  ;;  %1767 = vmatpush3.bf16.msra.mxu1 %v2002_v13  ;;  %1785 = vmatpush3.bf16.msra.mxu0 %v2003_v14  ;;  %v1597_v13 = vld [vmem:[%s2497_s4] ss:$0 sm:$0xff] }
  0xee   :  { %v608_v24 = vpop.f32.mrf.mxu0  ;;  %1768 = vmatprep.subr.bf16.mxu1 %v2004_v17  ;;  %1786 = vmatprep.subr.bf16.mxu0 %v2005_v18 }
  0xef   :  { %v612_v26 = vpack.c.bf16 %v611_v21, %v611_v21 }
  0xf0   :  { %v1891_v27 = vpop.f32.mrf.mxu0  ;;  %v625_v28 = vld [vmem:[#allocation2 + $0x18] sm:$0xff] }
  0xf1   :  { %613 = vst [vmem:[#allocation2 + $0x20] sm:$0xf] %v612_v26  ;;  %1769 = vmatpush3.bf16.msra.mxu1 %v2006_v22  ;;  %1787 = vmatpush3.bf16.msra.mxu0 %v2007_v23  ;;  %v1605_v31 = vcombine.high %v625_v28, %v625_v28  ;;  %v1604_v43 = vcombine.low %v625_v28, %v625_v28  ;;  %v1596_v27 = vld [vmem:[%s2498_s6] ss:$0 sm:$0xff] }
  0xf2   :  { %1770 = vmatprep.subr.bf16.mxu1 %v2008_v62  ;;  %1788 = vmatprep.subr.bf16.mxu0 %v2009_v25 }
  0xf3   :  { %1394 = vmatprep.mubr.bf16.mxu0 %v1605_v31 }
  0xf5   :  { %1771 = vmatpush3.bf16.msra.mxu1 %v2010_v29  ;;  %1789 = vmatpush3.bf16.msra.mxu0 %v2011_v30 }
  0xf6   :  { %1772 = vmatprep.subr.bf16.mxu1 %v2012_v32  ;;  %1790 = vmatprep.subr.bf16.mxu0 %v2013_v33 }
  0xf8   :  { %v2032_v50 = vld [vmem:[#allocation2 + $0x20] ss:$0 sps:$4 sm:$0xff]  }
  0xf9   :  { %1773 = vmatpush3.bf16.msra.mxu1 %v2014_v34  ;;  %1791 = vmatpush3.bf16.msra.mxu0 %v2015_v35 }
  0xfa   :  { %1792 = vmatprep.subr.bf16.mxu0 %v2018_v36  ;;  %1892 = vmatprep.subr.bf16.mxu1 %v2041_v0 }
  0xfc   :  { %1355 = vmatmul.mubr.bf16.vlgmr.msra.gmra.mxu1 %v1602_v37 }
  0xfd   :  { %1793 = vmatpush3.bf16.msra.mxu0 %v2019_v38  ;;  %1893 = vmatpush3.bf16.msra.mxu1 %v2020_v39 }
  0xfe   :  { %1794 = vmatprep.subr.bf16.mxu0 %v2021_v40  ;;  %1894 = vmatprep.subr.bf16.mxu1 %v2041_v0 }
  0xff   :  { %1908 = vmatprep.mubr.msk.bf16.mxu1 %vm2042_vm0, %v2041_v0 }
 0x101   :  { %1795 = vmatpush3.bf16.msra.mxu0 %v2022_v41  ;;  %1895 = vmatpush3.bf16.msra.mxu1 %v2023_v42 }
 0x102   :  { %1896 = vmatprep.subr.bf16.mxu1 %v2041_v0  ;;  %1912 = vmatprep.subr.bf16.mxu0 %v2041_v0 }
 0x104   :  { %1395 = vmatmul.mubr.bf16.vlgmr.msra.gmra.mxu0 %v1604_v43 }
 0x105   :  { %1897 = vmatpush3.bf16.msra.mxu1 %v2026_v44  ;;  %1928 = vmatprep.mubr.msk.bf16.mxu0 %vm2042_vm0, %v2041_v0 }
 0x106   :  { %1898 = vmatprep.subr.bf16.mxu1 %v2041_v0  ;;  %1913 = vmatpush3.bf16.msra.mxu0 %v2033_v51 }
 0x107   :  { %1914 = vmatprep.subr.bf16.mxu0 %v2041_v0 }
 0x109   :  { %1899 = vmatpush3.bf16.msra.mxu1 %v2027_v45 }
 0x10a   :  { %1900 = vmatprep.subr.bf16.mxu1 %v2041_v0  ;;  %1915 = vmatpush3.bf16.msra.mxu0 %v2034_v52 }
 0x10b   :  { %1916 = vmatprep.subr.bf16.mxu0 %v2041_v0 }
 0x10d   :  { %1901 = vmatpush3.bf16.msra.mxu1 %v2028_v46 }
 0x10e   :  { %1902 = vmatprep.subr.bf16.mxu1 %v2041_v0  ;;  %1917 = vmatpush3.bf16.msra.mxu0 %v2035_v53 }
 0x10f   :  { %1918 = vmatprep.subr.bf16.mxu0 %v2041_v0 }
 0x111   :  { %1903 = vmatpush3.bf16.msra.mxu1 %v2029_v47 }
 0x112   :  { %1904 = vmatprep.subr.bf16.mxu1 %v2041_v0  ;;  %1919 = vmatpush3.bf16.msra.mxu0 %v2036_v54 }
 0x113   :  { %1920 = vmatprep.subr.bf16.mxu0 %v2041_v0 }
 0x115   :  { %1905 = vmatpush3.bf16.msra.mxu1 %v2030_v48 }
 0x116   :  { %1906 = vmatprep.subr.bf16.mxu1 %v2041_v0  ;;  %1921 = vmatpush3.bf16.msra.mxu0 %v2037_v55 }
 0x117   :  { %1922 = vmatprep.subr.bf16.mxu0 %v2041_v0 }
 0x119   :  { %1907 = vmatpush3.bf16.msra.mxu1 %v2031_v49 }
 0x11a   :  { %1923 = vmatpush3.bf16.msra.mxu0 %v2038_v56 }
 0x11b   :  { %1924 = vmatprep.subr.bf16.mxu0 %v2041_v0 }
 0x11c   :  { %1909 = vmatmul.mubr.bf16.vlgmr.msra.gmra.mxu1 %v2032_v50 }
 0x11e   :  { %1925 = vmatpush3.bf16.msra.mxu0 %v2039_v57 }
 0x11f   :  { %1926 = vmatprep.subr.bf16.mxu0 %v2041_v0 }
 0x122   :  { %1927 = vmatpush3.bf16.msra.mxu0 %v2040_v58 }
 0x19c   :  { %v1730_v59 = vpop.f32.mrf.mxu1 }
 0x19e   :  { %v1731_v60 = vpop.f32.mrf.mxu1 }
 0x19f   :  { %v1732_v12 = vadd.f32 %v1731_v60, %v1730_v59 }
 0x1a0   :  { %v1733_v61 = vpop.f32.mrf.mxu1 }
 0x1a1   :  { %v1277_v15 = vadd.f32 %v1732_v12, %v1597_v13 }
 0x1a2   :  { %v1734_v63 = vpop.f32.mrf.mxu1 }
 0x1a4   :  { %v1752_v1 = vpop.f32.mrf.mxu0 }
 0x1a6   :  { %v1753_v2 = vpop.f32.mrf.mxu0 }
 0x1a7   :  { %v1754_v14 = vadd.f32 %v1753_v2, %v1752_v1 }
 0x1a8   :  { %v1755_v3 = vpop.f32.mrf.mxu0 }
 0x1a9   :  { %v1317_v17 = vadd.f32 %v1754_v14, %v1277_v15 }
 0x1aa   :  { %v1756_v4 = vpop.f32.mrf.mxu0 }
 0x1bc   :  { %v1774_v5 = vpop.f32.mrf.mxu1 }
 0x1be   :  { %v1775_v6 = vpop.f32.mrf.mxu1 }
 0x1bf   :  { %v1776_v16 = vadd.f32 %v1775_v6, %v1774_v5 }
 0x1c0   :  { %v1777_v7 = vpop.f32.mrf.mxu1 }
 0x1c1   :  { %v1357_v19 = vadd.f32 %v1776_v16, %v1317_v17 }
 0x1c2   :  { %v1778_v8 = vpop.f32.mrf.mxu1 }
 0x1c4   :  { %v1796_v9 = vpop.f32.mrf.mxu0 }
 0x1c6   :  { %v1797_v10 = vpop.f32.mrf.mxu0 }
 0x1c7   :  { %v1798_v18 = vadd.f32 %v1797_v10, %v1796_v9 }
 0x1c8   :  { %v1799_v0 = vpop.f32.mrf.mxu0 }
 0x1c9   :  { %v1397_v20 = vadd.f32 %v1798_v18, %v1357_v19 }
 0x1ca   :  { %v1800_v11 = vpop.f32.mrf.mxu0 }
 0x1dc   :  { %v1436_v21 = vpop.f32.mrf.mxu1 }
 0x1dd   :  { %v1437_v22 = vadd.f32 %v1436_v21, %v1397_v20 }
 0x1de   :  { %v1910_v23 = vpop.f32.mrf.mxu1 }
 0x1df   :  { %v1442_v24 = vmax.f32 %v1437_v22, 0.0 }
 0x1e0   :  { %v1439_v62 = vpop.f32.mrf.mxu1 }
 0x1e1   :  { %v1443_v25 = vpack.c.bf16 %v1442_v24, %v1442_v24 }
 0x1e2   :  { %v1911_v26 = vpop.f32.mrf.mxu1 }
 0x1e3   :  { %1929 = vmatmul.mubr.bf16.vlgmr.msra.gmra.mxu0 %v1443_v25 }
 0x2a3   :  { %v1543_v28 = vpop.f32.mrf.mxu0 }
 0x2a4   :  { %v1549_v29 = vadd.f32 %v1596_v27, %v1543_v28 }
 0x2a5   :  { %v1930_v30 = vpop.f32.mrf.mxu0 }
 0x2a6   :  { %1555 = vst [vmem:[%s2499_s7] sm:$0xff] %v1549_v29 }
 0x2a7   :  { %v1546_v31 = vpop.f32.mrf.mxu0 }
 0x2a9   :  { %v1931_v32 = vpop.f32.mrf.mxu0 }

// kernel: _lambda_.1
= control target key start
LH: loop header
LB: loop body
LE: loop exit
PB: predicated region body
PF: predicated region fallthrough
CT: control target
= control target key end

     0   :  { %v2041_v0 = vmov 0.0   ;;  %vm2042_vm0 = vmmov 0   ;;  %vm55_vm1 = vcmask 261120   ;;  %s2492_s1 = inlined_call_operand.vmem [shape: bf16[32,128], index: 1, kind: input, shape index: {}]   ;;  %s2493_s0 = inlined_call_operand.vmem [shape: bf16[9,8,32], index: 0, kind: input, shape index: {}]   ;;  %s2494_s3 = inlined_call_operand.vmem [shape: bf16[1152,128], index: 3, kind: input, shape index: {}]   ;;  %s2495_s2 = inlined_call_operand.vmem [shape: f32[1,128], index: 2, kind: input, shape index: {}]   ;;  %s2496_s5 = inlined_call_operand.vmem [shape: bf16[128,128], index: 5, kind: input, shape index: {}]   ;;  %s2497_s4 = inlined_call_operand.vmem [shape: f32[1,128], index: 4, kind: input, shape index: {}]   ;;  %s2498_s6 = inlined_call_operand.vmem [shape: f32[1,128], index: 6, kind: input, shape index: {}]   ;;  %s2499_s7 = inlined_call_operand.vmem [shape: f32[8,128], index: 7, kind: output, shape index: {}]  }
   0x1   :  { %1820 = vmatprep.subr.bf16.mxu0 %v2041_v0  ;;  %1828 = vmatprep.subr.bf16.mxu1 %v2041_v0  ;;  %v1934_v1 = vld [vmem:[%s2492_s1 + $0x8] sm:$0xff]   ;;  %v1936_v3 = vld [vmem:[%s2492_s1] sm:$0xff]   ;;  %v1576_v17 = vld [vmem:[%s2493_s0 + $0x10] sm:$0xf] }
   0x2   :  { %v1935_v2 = vld [vmem:[%s2492_s1 + $0x8] sm:$0xff]   ;;  %1824 = vmatprep.mubr.msk.bf16.mxu0 %vm2042_vm0, %v2041_v0  ;;  %1832 = vmatprep.mubr.msk.bf16.mxu1 %vm2042_vm0, %v2041_v0  ;;  %v1937_v4 = vld [vmem:[%s2492_s1] sm:$0xff]   ;;  %v1580_v18 = vld [vmem:[%s2493_s0 + $0x14] sm:$0xf] }
   0x3   :  { %1821 = vmatpush3.bf16.msra.mxu0 %v1934_v1  ;;  %1829 = vmatpush3.bf16.msra.mxu1 %v1935_v2  ;;  %v38_v5 = vld [vmem:[%s2493_s0] sm:$0xf]  ;;  %v1564_v6 = vld [vmem:[%s2493_s0 + $0x4] sm:$0xf]  ;;  %v1938_v7 = vld [vmem:[%s2492_s1 + $0x8] sm:$0xff]  }
   0x4   :  { %1822 = vmatprep.subr.bf16.mxu0 %v2041_v0  ;;  %1830 = vmatprep.subr.bf16.mxu1 %v2041_v0  ;;  %v1939_v8 = vld [vmem:[%s2492_s1 + $0x8] sm:$0xff]   ;;  %v1940_v9 = vld [vmem:[%s2492_s1] sm:$0xff]   ;;  %v1584_v23 = vld [vmem:[%s2493_s0 + $0x18] sm:$0xf] }
   0x5   :  { %v1941_v10 = vld [vmem:[%s2492_s1] sm:$0xff]   ;;  %v1568_v11 = vld [vmem:[%s2493_s0 + $0x8] sm:$0xf]  ;;  %v1572_v12 = vld [vmem:[%s2493_s0 + $0xc] sm:$0xf] }
   0x6   :  { %v1942_v13 = vld [vmem:[%s2492_s1 + $0x8] sm:$0xff]   ;;  %v1944_v15 = vld [vmem:[%s2492_s1] sm:$0xff]   ;;  %v1952_v24 = vld [vmem:[%s2494_s3 + $0x78] sm:$0xff]  }
   0x7   :  { %1823 = vmatpush3.bf16.msra.mxu0 %v1936_v3  ;;  %1831 = vmatpush3.bf16.msra.mxu1 %v1937_v4  ;;  %v1943_v14 = vld [vmem:[%s2492_s1 + $0x8] sm:$0xff]   ;;  %v1945_v16 = vld [vmem:[%s2492_s1] sm:$0xff]   ;;  %v1588_v25 = vld [vmem:[%s2493_s0 + $0x1c] sm:$0xf] }
   0x8   :  { %1836 = vmatprep.subr.bf16.mxu0 %v2041_v0  ;;  %1844 = vmatprep.subr.bf16.mxu1 %v2041_v0  ;;  %v1946_v19 = vld [vmem:[%s2492_s1 + $0x8] sm:$0xff]   ;;  %v1948_v21 = vld [vmem:[%s2492_s1] sm:$0xff]   ;;  %v1953_v27 = vld [vmem:[%s2494_s3 + $0x38] sm:$0xff]  }
   0x9   :  { %v1947_v20 = vld [vmem:[%s2492_s1 + $0x8] sm:$0xff]   ;;  %v1949_v22 = vld [vmem:[%s2492_s1] sm:$0xff]   ;;  %v1954_v29 = vld [vmem:[%s2494_s3 + $0x70] sm:$0xff]  }
   0xa   :  { %1825 = vmatmul.mubr.msk.bf16.vlgmr.msra.gmra.mxu0 %vm55_vm1, %v38_v5  ;;  %1833 = vmatmul.mubr.msk.bf16.vlgmr.msra.gmra.mxu1 %vm55_vm1, %v1564_v6  ;;  %v1950_v26 = vld [vmem:[%s2492_s1 + $0x8] sm:$0xff]   ;;  %v1951_v28 = vld [vmem:[%s2492_s1] sm:$0xff]   ;;  %v1957_v30 = vld [vmem:[%s2494_s3 + $0xf8] sm:$0xff]  }
   0xb   :  { %1837 = vmatpush3.bf16.msra.mxu0 %v1938_v7  ;;  %1845 = vmatpush3.bf16.msra.mxu1 %v1939_v8  ;;  %v1955_v31 = vld [vmem:[%s2494_s3 + $0x30] sm:$0xff]   ;;  %v1956_v32 = vld [vmem:[%s2494_s3 + $0x68] sm:$0xff]   ;;  %v1592_v33 = vld [vmem:[%s2493_s0 + $0x20] sm:$0xf] }
   0xc   :  { %1838 = vmatprep.subr.bf16.mxu0 %v2041_v0  ;;  %1846 = vmatprep.subr.bf16.mxu1 %v2041_v0  ;;  %v1959_v34 = vld [vmem:[%s2494_s3 + $0xb8] sm:$0xff]   ;;  %v1961_v35 = vld [vmem:[%s2494_s3 + $0xf0] sm:$0xff]   ;;  %v1958_v36 = vld [vmem:[%s2494_s3 + $0x28] sm:$0xff]  }
   0xd   :  { %1840 = vmatprep.mubr.msk.bf16.mxu0 %vm2042_vm0, %v2041_v0  ;;  %1848 = vmatprep.mubr.msk.bf16.mxu1 %vm2042_vm0, %v2041_v0  ;;  %v1960_v37 = vld [vmem:[%s2494_s3 + $0x60] sm:$0xff]   ;;  %v1963_v38 = vld [vmem:[%s2494_s3 + $0xb0] sm:$0xff]   ;;  %v1964_v40 = vld [vmem:[%s2494_s3 + $0x58] sm:$0xff]  }
   0xe   :  { %v1962_v39 = vld [vmem:[%s2494_s3 + $0x20] sm:$0xff]   ;;  %v1965_v41 = vld [vmem:[%s2494_s3 + $0xe8] sm:$0xff]   ;;  %v1966_v42 = vld [vmem:[%s2494_s3 + $0x18] sm:$0xff]  }
   0xf   :  { %1839 = vmatpush3.bf16.msra.mxu0 %v1940_v9  ;;  %1847 = vmatpush3.bf16.msra.mxu1 %v1941_v10  ;;  %v1967_v43 = vld [vmem:[%s2494_s3 + $0xa8] sm:$0xff]   ;;  %v1968_v44 = vld [vmem:[%s2494_s3 + $0x50] sm:$0xff]   ;;  %v1969_v45 = vld [vmem:[%s2494_s3 + $0xe0] sm:$0xff]  }
  0x10   :  { %1852 = vmatprep.subr.bf16.mxu0 %v2041_v0  ;;  %1860 = vmatprep.subr.bf16.mxu1 %v2041_v0  ;;  %v1970_v46 = vld [vmem:[%s2494_s3 + $0x10] sm:$0xff]   ;;  %v1971_v47 = vld [vmem:[%s2494_s3 + $0xa0] sm:$0xff]   ;;  %v1972_v48 = vld [vmem:[%s2494_s3 + $0x48] sm:$0xff]  }
  0x11   :  { %v1973_v49 = vld [vmem:[%s2494_s3 + $0xd8] sm:$0xff]   ;;  %v1974_v50 = vld [vmem:[%s2494_s3 + $0x8] sm:$0xff]   ;;  %v1976_v52 = vld [vmem:[%s2494_s3 + $0x40] sm:$0xff]  }
  0x12   :  { %1841 = vmatmul.mubr.msk.bf16.vlgmr.msra.gmra.mxu0 %vm55_vm1, %v1568_v11  ;;  %1849 = vmatmul.mubr.msk.bf16.vlgmr.msra.gmra.mxu1 %vm55_vm1, %v1572_v12  ;;  %v1975_v51 = vld [vmem:[%s2494_s3 + $0x98] sm:$0xff]   ;;  %v1977_v53 = vld [vmem:[%s2494_s3 + $0xd0] sm:$0xff]   ;;  %v1978_v54 = vld [vmem:[%s2494_s3] sm:$0xff]  }
  0x13   :  { %1853 = vmatpush3.bf16.msra.mxu0 %v1942_v13  ;;  %1861 = vmatpush3.bf16.msra.mxu1 %v1943_v14  ;;  %v1979_v55 = vld [vmem:[%s2494_s3 + $0x90] sm:$0xff]   ;;  %v1982_v56 = vld [vmem:[%s2494_s3 + $0xc8] sm:$0xff]   ;;  %v1983_v57 = vld [vmem:[%s2494_s3 + $0x178] sm:$0xff]  }
  0x14   :  { %1854 = vmatprep.subr.bf16.mxu0 %v2041_v0  ;;  %1862 = vmatprep.subr.bf16.mxu1 %v2041_v0  ;;  %v1984_v58 = vld [vmem:[%s2494_s3 + $0x88] sm:$0xff]   ;;  %v1986_v59 = vld [vmem:[%s2494_s3 + $0xc0] sm:$0xff]   ;;  %v1993_v61 = vld [vmem:[%s2494_s3 + $0x1f8] sm:$0xff]  }
  0x15   :  { %1856 = vmatprep.mubr.msk.bf16.mxu0 %vm2042_vm0, %v2041_v0  ;;  %1864 = vmatprep.mubr.msk.bf16.mxu1 %vm2042_vm0, %v2041_v0  ;;  %v1988_v60 = vld [vmem:[%s2494_s3 + $0x80] sm:$0xff]  }
  0x16   :  { %v2314_v62 = vld [vmem:[%s2495_s2] ss:$0 sm:$0xff] }
  0x17   :  { %1855 = vmatpush3.bf16.msra.mxu0 %v1944_v15  ;;  %1863 = vmatpush3.bf16.msra.mxu1 %v1945_v16 }
  0x18   :  { %1868 = vmatprep.subr.bf16.mxu0 %v2041_v0  ;;  %1876 = vmatprep.subr.bf16.mxu1 %v2041_v0 }
  0x1a   :  { %1857 = vmatmul.mubr.msk.bf16.vlgmr.msra.gmra.mxu0 %vm55_vm1, %v1576_v17  ;;  %1865 = vmatmul.mubr.msk.bf16.vlgmr.msra.gmra.mxu1 %vm55_vm1, %v1580_v18 }
  0x1b   :  { %1869 = vmatpush3.bf16.msra.mxu0 %v1946_v19  ;;  %1877 = vmatpush3.bf16.msra.mxu1 %v1947_v20 }
  0x1c   :  { %1870 = vmatprep.subr.bf16.mxu0 %v2041_v0  ;;  %1878 = vmatprep.subr.bf16.mxu1 %v2041_v0 }
  0x1d   :  { %1872 = vmatprep.mubr.msk.bf16.mxu0 %vm2042_vm0, %v2041_v0  ;;  %1880 = vmatprep.mubr.msk.bf16.mxu1 %vm2042_vm0, %v2041_v0 }
  0x1f   :  { %1871 = vmatpush3.bf16.msra.mxu0 %v1948_v21  ;;  %1879 = vmatpush3.bf16.msra.mxu1 %v1949_v22 }
  0x20   :  { %1884 = vmatprep.subr.bf16.mxu0 %v2041_v0  ;;  %1714 = vmatprep.subr.bf16.mxu1 %v1952_v24 }
  0x22   :  { %1873 = vmatmul.mubr.msk.bf16.vlgmr.msra.gmra.mxu0 %vm55_vm1, %v1584_v23  ;;  %1881 = vmatmul.mubr.msk.bf16.vlgmr.msra.gmra.mxu1 %vm55_vm1, %v1588_v25 }
  0x23   :  { %1885 = vmatpush3.bf16.msra.mxu0 %v1950_v26  ;;  %1888 = vmatprep.mubr.msk.bf16.mxu0 %vm2042_vm0, %v2041_v0 }
  0x24   :  { %1886 = vmatprep.subr.bf16.mxu0 %v2041_v0  ;;  %1715 = vmatpush3.bf16.msra.mxu1 %v1953_v27 }
  0x25   :  { %1716 = vmatprep.subr.bf16.mxu1 %v1954_v29 }
  0x27   :  { %1887 = vmatpush3.bf16.msra.mxu0 %v1951_v28 }
  0x28   :  { %1736 = vmatprep.subr.bf16.mxu0 %v1957_v30  ;;  %1717 = vmatpush3.bf16.msra.mxu1 %v1955_v31  ;;  %v1985_v31 = vld [vmem:[%s2494_s3 + $0x138] sm:$0xff]  }
  0x29   :  { %1718 = vmatprep.subr.bf16.mxu1 %v1956_v32 }
  0x2a   :  { %1889 = vmatmul.mubr.msk.bf16.vlgmr.msra.gmra.mxu0 %vm55_vm1, %v1592_v33  ;;  %v1987_v33 = vld [vmem:[%s2494_s3 + $0x170] sm:$0xff]  }
  0x2b   :  { %1737 = vmatpush3.bf16.msra.mxu0 %v1959_v34 }
  0x2c   :  { %1738 = vmatprep.subr.bf16.mxu0 %v1961_v35  ;;  %1719 = vmatpush3.bf16.msra.mxu1 %v1958_v36 }
  0x2d   :  { %1720 = vmatprep.subr.bf16.mxu1 %v1960_v37 }
  0x2f   :  { %1739 = vmatpush3.bf16.msra.mxu0 %v1963_v38 }
  0x30   :  { %1721 = vmatpush3.bf16.msra.mxu1 %v1962_v39  ;;  %1740 = vmatprep.subr.bf16.mxu0 %v1965_v41 }
  0x31   :  { %1722 = vmatprep.subr.bf16.mxu1 %v1964_v40  ;;  %v1989_v40 = vld [vmem:[%s2494_s3 + $0x130] sm:$0xff]  }
  0x33   :  { %1741 = vmatpush3.bf16.msra.mxu0 %v1967_v43  ;;  %v1992_v43 = vld [vmem:[%s2494_s3 + $0x168] sm:$0xff]  }
  0x34   :  { %1723 = vmatpush3.bf16.msra.mxu1 %v1966_v42  ;;  %1742 = vmatprep.subr.bf16.mxu0 %v1969_v45 }
  0x35   :  { %1724 = vmatprep.subr.bf16.mxu1 %v1968_v44 }
  0x37   :  { %1743 = vmatpush3.bf16.msra.mxu0 %v1971_v47 }
  0x38   :  { %1725 = vmatpush3.bf16.msra.mxu1 %v1970_v46  ;;  %1744 = vmatprep.subr.bf16.mxu0 %v1973_v49 }
  0x39   :  { %1726 = vmatprep.subr.bf16.mxu1 %v1972_v48 }
  0x3b   :  { %1745 = vmatpush3.bf16.msra.mxu0 %v1975_v51 }
  0x3c   :  { %1727 = vmatpush3.bf16.msra.mxu1 %v1974_v50  ;;  %1746 = vmatprep.subr.bf16.mxu0 %v1977_v53  ;;  %v1995_v53 = vld [vmem:[%s2494_s3 + $0x1b8] sm:$0xff]  }
  0x3d   :  { %1728 = vmatprep.subr.bf16.mxu1 %v1976_v52  ;;  %v1994_v52 = vld [vmem:[%s2494_s3 + $0x128] sm:$0xff]  }
  0x3f   :  { %1747 = vmatpush3.bf16.msra.mxu0 %v1979_v55  ;;  %v1996_v55 = vld [vmem:[%s2494_s3 + $0x160] sm:$0xff]  }
  0x40   :  { %1729 = vmatpush3.bf16.msra.mxu1 %v1978_v54  ;;  %1748 = vmatprep.subr.bf16.mxu0 %v1982_v56  ;;  %v1997_v56 = vld [vmem:[%s2494_s3 + $0x1f0] sm:$0xff]  }
  0x41   :  { %1758 = vmatprep.subr.bf16.mxu1 %v1983_v57 }
  0x43   :  { %1749 = vmatpush3.bf16.msra.mxu0 %v1984_v58 }
  0x44   :  { %1750 = vmatprep.subr.bf16.mxu0 %v1986_v59 }
  0x47   :  { %1751 = vmatpush3.bf16.msra.mxu0 %v1988_v60 }
  0x48   :  { %1780 = vmatprep.subr.bf16.mxu0 %v1993_v61 }
  0xca   :  { %v93_v63 = vpop.f32.mrf.mxu0  ;;  %v157_v2 = vpop.f32.mrf.mxu1 }
  0xcb   :  { %v94_v1 = vadd.f32 %v2314_v62, %v93_v63  ;;  %v158_v3 = vadd.f32 %v2314_v62, %v157_v2  ;;  %v1999_v2 = vld [vmem:[%s2494_s3 + $0x1b0] sm:$0xff]  }
  0xcc   :  { %v1826_v4 = vpop.f32.mrf.mxu0  ;;  %v1834_v6 = vpop.f32.mrf.mxu1 }
  0xcd   :  { %v99_v5 = vmax.f32 %v94_v1, 0.0  ;;  %v163_v7 = vmax.f32 %v158_v3, 0.0  ;;  %v1998_v1 = vld [vmem:[%s2494_s3 + $0x120] sm:$0xff]   ;;  %v2001_v6 = vld [vmem:[%s2494_s3 + $0x1e8] sm:$0xff]  }
  0xce   :  { %v96_v8 = vpop.f32.mrf.mxu0  ;;  %v160_v10 = vpop.f32.mrf.mxu1 }
  0xcf   :  { %v100_v9 = vpack.c.bf16 %v99_v5, %v99_v5  ;;  %v164_v11 = vpack.c.bf16 %v163_v7, %v163_v7  ;;  %v2000_v5 = vld [vmem:[%s2494_s3 + $0x158] sm:$0xff]  }
  0xd0   :  { %v1827_v12 = vpop.f32.mrf.mxu0  ;;  %v1835_v13 = vpop.f32.mrf.mxu1 }
  0xd1   :  { %101 = vst [vmem:[#allocation2] sm:$0xf] %v100_v9  ;;  %165 = vst [vmem:[#allocation2 + $0x4] sm:$0xf] %v164_v11  ;;  %v2002_v13 = vld [vmem:[%s2494_s3 + $0x118] sm:$0xff]  }
  0xd2   :  { %v221_v14 = vpop.f32.mrf.mxu0  ;;  %v285_v16 = vpop.f32.mrf.mxu1 }
  0xd3   :  { %v222_v15 = vadd.f32 %v2314_v62, %v221_v14  ;;  %v286_v17 = vadd.f32 %v2314_v62, %v285_v16  ;;  %v2003_v14 = vld [vmem:[%s2494_s3 + $0x1a8] sm:$0xff]  }
  0xd4   :  { %v1842_v18 = vpop.f32.mrf.mxu0  ;;  %v1850_v20 = vpop.f32.mrf.mxu1 }
  0xd5   :  { %v227_v19 = vmax.f32 %v222_v15, 0.0  ;;  %v291_v21 = vmax.f32 %v286_v17, 0.0  ;;  %v2004_v17 = vld [vmem:[%s2494_s3 + $0x150] sm:$0xff]   ;;  %v2005_v18 = vld [vmem:[%s2494_s3 + $0x1e0] sm:$0xff]  }
  0xd6   :  { %v224_v22 = vpop.f32.mrf.mxu0  ;;  %v288_v24 = vpop.f32.mrf.mxu1 }
  0xd7   :  { %v228_v23 = vpack.c.bf16 %v227_v19, %v227_v19  ;;  %v292_v25 = vpack.c.bf16 %v291_v21, %v291_v21  ;;  %v2006_v22 = vld [vmem:[%s2494_s3 + $0x110] sm:$0xff]  }
  0xd8   :  { %v1843_v26 = vpop.f32.mrf.mxu0  ;;  %v622_v27 = vld [vmem:[#allocation2] sm:$0xff]  ;;  %v1851_v28 = vpop.f32.mrf.mxu1 }
  0xd9   :  { %229 = vst [vmem:[#allocation2 + $0x8] sm:$0xf] %v228_v23  ;;  %293 = vst [vmem:[#allocation2 + $0xc] sm:$0xf] %v292_v25  ;;  %v1598_v29 = vcombine.low %v622_v27, %v622_v27  ;;  %v1599_v30 = vcombine.high %v622_v27, %v622_v27  ;;  %v2007_v23 = vld [vmem:[%s2494_s3 + $0x1a0] sm:$0xff]   ;;  %v2009_v25 = vld [vmem:[%s2494_s3 + $0x1d8] sm:$0xff]  }
  0xda   :  { %v349_v32 = vpop.f32.mrf.mxu0  ;;  %v413_v35 = vpop.f32.mrf.mxu1 }
  0xdb   :  { %v350_v34 = vadd.f32 %v2314_v62, %v349_v32  ;;  %1274 = vmatprep.mubr.bf16.mxu1 %v1599_v30  ;;  %v414_v36 = vadd.f32 %v2314_v62, %v413_v35  ;;  %v2011_v30 = vld [vmem:[%s2494_s3 + $0x198] sm:$0xff]   ;;  %v2012_v32 = vld [vmem:[%s2494_s3 + $0x140] sm:$0xff]   ;;  %v2015_v35 = vld [vmem:[%s2494_s3 + $0x190] sm:$0xff]  }
  0xdc   :  { %v1858_v37 = vpop.f32.mrf.mxu0  ;;  %1275 = vmatmul.mubr.bf16.vlgmr.msra.gmra.mxu1 %v1598_v29  ;;  %v1866_v39 = vpop.f32.mrf.mxu1  ;;  %v2010_v29 = vld [vmem:[%s2494_s3 + $0x108] sm:$0xff]  }
  0xdd   :  { %v355_v38 = vmax.f32 %v350_v34, 0.0  ;;  %1759 = vmatpush3.bf16.msra.mxu1 %v1985_v31  ;;  %v419_v41 = vmax.f32 %v414_v36, 0.0  ;;  %v2014_v34 = vld [vmem:[%s2494_s3 + $0x100] sm:$0xff]   ;;  %v2018_v36 = vld [vmem:[%s2494_s3 + $0x1c8] sm:$0xff]   ;;  %v2020_v39 = vld [vmem:[%s2494_s3 + $0x238] sm:$0xff]  }
  0xde   :  { %v352_v42 = vpop.f32.mrf.mxu0  ;;  %1760 = vmatprep.subr.bf16.mxu1 %v1987_v33  ;;  %v416_v45 = vpop.f32.mrf.mxu1  ;;  %v2013_v33 = vld [vmem:[%s2494_s3 + $0x1d0] sm:$0xff]  }
  0xdf   :  { %v356_v44 = vpack.c.bf16 %v355_v38, %v355_v38  ;;  %v420_v46 = vpack.c.bf16 %v419_v41, %v419_v41  ;;  %v2019_v38 = vld [vmem:[%s2494_s3 + $0x188] sm:$0xff]   ;;  %v2022_v41 = vld [vmem:[%s2494_s3 + $0x180] sm:$0xff]   ;;  %v2023_v42 = vld [vmem:[%s2494_s3 + $0x230] sm:$0xff]  }
  0xe0   :  { %v1859_v47 = vpop.f32.mrf.mxu0  ;;  %v623_v48 = vld [vmem:[#allocation2 + $0x8] sm:$0xff]  ;;  %v1867_v49 = vpop.f32.mrf.mxu1  ;;  %v2027_v45 = vld [vmem:[%s2494_s3 + $0x220] sm:$0xff]  }
  0xe1   :  { %357 = vst [vmem:[#allocation2 + $0x10] sm:$0xf] %v356_v44  ;;  %1761 = vmatpush3.bf16.msra.mxu1 %v1989_v40  ;;  %v1600_v50 = vcombine.low %v623_v48, %v623_v48  ;;  %v1601_v51 = vcombine.high %v623_v48, %v623_v48  ;;  %421 = vst [vmem:[#allocation2 + $0x14] sm:$0xf] %v420_v46  ;;  %v2021_v40 = vld [vmem:[%s2494_s3 + $0x1c0] sm:$0xff]   ;;  %v2026_v44 = vld [vmem:[%s2494_s3 + $0x228] sm:$0xff]  }
  0xe2   :  { %v477_v54 = vpop.f32.mrf.mxu0  ;;  %1762 = vmatprep.subr.bf16.mxu1 %v1992_v43  ;;  %v541_v58 = vpop.f32.mrf.mxu1  ;;  %v2028_v46 = vld [vmem:[%s2494_s3 + $0x218] sm:$0xff]   ;;  %v2029_v47 = vld [vmem:[%s2494_s3 + $0x210] sm:$0xff]   ;;  %v2030_v48 = vld [vmem:[%s2494_s3 + $0x208] sm:$0xff]  }
  0xe3   :  { %v478_v57 = vadd.f32 %v2314_v62, %v477_v54  ;;  %1314 = vmatprep.mubr.bf16.mxu0 %v1601_v51  ;;  %v542_v59 = vadd.f32 %v2314_v62, %v541_v58  ;;  %v2031_v49 = vld [vmem:[%s2494_s3 + $0x200] sm:$0xff]   ;;  %v2033_v51 = vld [vmem:[%s2496_s5 + $0x38] sm:$0xff]  }
  0xe4   :  { %v1874_v60 = vpop.f32.mrf.mxu0  ;;  %1315 = vmatmul.mubr.bf16.vlgmr.msra.gmra.mxu0 %v1600_v50  ;;  %v1882_v63 = vpop.f32.mrf.mxu1  ;;  %v2036_v54 = vld [vmem:[%s2496_s5 + $0x20] sm:$0xff]  }
  0xe5   :  { %v483_v61 = vmax.f32 %v478_v57, 0.0  ;;  %1763 = vmatpush3.bf16.msra.mxu1 %v1994_v52  ;;  %1781 = vmatpush3.bf16.msra.mxu0 %v1995_v53  ;;  %v547_v3 = vmax.f32 %v542_v59, 0.0  ;;  %v2034_v52 = vld [vmem:[%s2496_s5 + $0x30] sm:$0xff]   ;;  %v2035_v53 = vld [vmem:[%s2496_s5 + $0x28] sm:$0xff]   ;;  %v2040_v58 = vld [vmem:[%s2496_s5] sm:$0xff]  }
  0xe6   :  { %v480_v4 = vpop.f32.mrf.mxu0  ;;  %1764 = vmatprep.subr.bf16.mxu1 %v1996_v55  ;;  %1782 = vmatprep.subr.bf16.mxu0 %v1997_v56  ;;  %v544_v8 = vpop.f32.mrf.mxu1  ;;  %v2037_v55 = vld [vmem:[%s2496_s5 + $0x18] sm:$0xff]   ;;  %v2038_v56 = vld [vmem:[%s2496_s5 + $0x10] sm:$0xff]   ;;  %v2039_v57 = vld [vmem:[%s2496_s5 + $0x8] sm:$0xff]  }
  0xe7   :  { %v484_v7 = vpack.c.bf16 %v483_v61, %v483_v61  ;;  %v548_v9 = vpack.c.bf16 %v547_v3, %v547_v3 }
  0xe8   :  { %v1875_v10 = vpop.f32.mrf.mxu0  ;;  %v624_v11 = vld [vmem:[#allocation2 + $0x10] sm:$0xff]  ;;  %v1883_v12 = vpop.f32.mrf.mxu1 }
  0xe9   :  { %485 = vst [vmem:[#allocation2 + $0x18] sm:$0xf] %v484_v7  ;;  %1765 = vmatpush3.bf16.msra.mxu1 %v1998_v1  ;;  %1783 = vmatpush3.bf16.msra.mxu0 %v1999_v2  ;;  %549 = vst [vmem:[#allocation2 + $0x1c] sm:$0xf] %v548_v9  ;;  %v1603_v15 = vcombine.high %v624_v11, %v624_v11  ;;  %v1602_v37 = vcombine.low %v624_v11, %v624_v11 }
  0xea   :  { %v605_v16 = vpop.f32.mrf.mxu0  ;;  %1766 = vmatprep.subr.bf16.mxu1 %v2000_v5  ;;  %1784 = vmatprep.subr.bf16.mxu0 %v2001_v6 }
  0xeb   :  { %v606_v19 = vadd.f32 %v2314_v62, %v605_v16  ;;  %1354 = vmatprep.mubr.bf16.mxu1 %v1603_v15  ;;  %v2008_v62 = vld [vmem:[%s2494_s3 + $0x148] sm:$0xff]  }
  0xec   :  { %v1890_v20 = vpop.f32.mrf.mxu0 }
  0xed   :  { %v611_v21 = vmax.f32 %v606_v19, 0.0  ;;  %1767 = vmatpush3.bf16.msra.mxu1 %v2002_v13  ;;  %1785 = vmatpush3.bf16.msra.mxu0 %v2003_v14  ;;  %v1597_v13 = vld [vmem:[%s2497_s4] ss:$0 sm:$0xff] }
  0xee   :  { %v608_v24 = vpop.f32.mrf.mxu0  ;;  %1768 = vmatprep.subr.bf16.mxu1 %v2004_v17  ;;  %1786 = vmatprep.subr.bf16.mxu0 %v2005_v18 }
  0xef   :  { %v612_v26 = vpack.c.bf16 %v611_v21, %v611_v21 }
  0xf0   :  { %v1891_v27 = vpop.f32.mrf.mxu0  ;;  %v625_v28 = vld [vmem:[#allocation2 + $0x18] sm:$0xff] }
  0xf1   :  { %613 = vst [vmem:[#allocation2 + $0x20] sm:$0xf] %v612_v26  ;;  %1769 = vmatpush3.bf16.msra.mxu1 %v2006_v22  ;;  %1787 = vmatpush3.bf16.msra.mxu0 %v2007_v23  ;;  %v1605_v31 = vcombine.high %v625_v28, %v625_v28  ;;  %v1604_v43 = vcombine.low %v625_v28, %v625_v28  ;;  %v1596_v27 = vld [vmem:[%s2498_s6] ss:$0 sm:$0xff] }
  0xf2   :  { %1770 = vmatprep.subr.bf16.mxu1 %v2008_v62  ;;  %1788 = vmatprep.subr.bf16.mxu0 %v2009_v25 }
  0xf3   :  { %1394 = vmatprep.mubr.bf16.mxu0 %v1605_v31 }
  0xf5   :  { %1771 = vmatpush3.bf16.msra.mxu1 %v2010_v29  ;;  %1789 = vmatpush3.bf16.msra.mxu0 %v2011_v30 }
  0xf6   :  { %1772 = vmatprep.subr.bf16.mxu1 %v2012_v32  ;;  %1790 = vmatprep.subr.bf16.mxu0 %v2013_v33 }
  0xf8   :  { %v2032_v50 = vld [vmem:[#allocation2 + $0x20] ss:$0 sps:$4 sm:$0xff]  }
  0xf9   :  { %1773 = vmatpush3.bf16.msra.mxu1 %v2014_v34  ;;  %1791 = vmatpush3.bf16.msra.mxu0 %v2015_v35 }
  0xfa   :  { %1792 = vmatprep.subr.bf16.mxu0 %v2018_v36  ;;  %1892 = vmatprep.subr.bf16.mxu1 %v2041_v0 }
  0xfc   :  { %1355 = vmatmul.mubr.bf16.vlgmr.msra.gmra.mxu1 %v1602_v37 }
  0xfd   :  { %1793 = vmatpush3.bf16.msra.mxu0 %v2019_v38  ;;  %1893 = vmatpush3.bf16.msra.mxu1 %v2020_v39 }
  0xfe   :  { %1794 = vmatprep.subr.bf16.mxu0 %v2021_v40  ;;  %1894 = vmatprep.subr.bf16.mxu1 %v2041_v0 }
  0xff   :  { %1908 = vmatprep.mubr.msk.bf16.mxu1 %vm2042_vm0, %v2041_v0 }
 0x101   :  { %1795 = vmatpush3.bf16.msra.mxu0 %v2022_v41  ;;  %1895 = vmatpush3.bf16.msra.mxu1 %v2023_v42 }
 0x102   :  { %1896 = vmatprep.subr.bf16.mxu1 %v2041_v0  ;;  %1912 = vmatprep.subr.bf16.mxu0 %v2041_v0 }
 0x104   :  { %1395 = vmatmul.mubr.bf16.vlgmr.msra.gmra.mxu0 %v1604_v43 }
 0x105   :  { %1897 = vmatpush3.bf16.msra.mxu1 %v2026_v44  ;;  %1928 = vmatprep.mubr.msk.bf16.mxu0 %vm2042_vm0, %v2041_v0 }
 0x106   :  { %1898 = vmatprep.subr.bf16.mxu1 %v2041_v0  ;;  %1913 = vmatpush3.bf16.msra.mxu0 %v2033_v51 }
 0x107   :  { %1914 = vmatprep.subr.bf16.mxu0 %v2041_v0 }
 0x109   :  { %1899 = vmatpush3.bf16.msra.mxu1 %v2027_v45 }
 0x10a   :  { %1900 = vmatprep.subr.bf16.mxu1 %v2041_v0  ;;  %1915 = vmatpush3.bf16.msra.mxu0 %v2034_v52 }
 0x10b   :  { %1916 = vmatprep.subr.bf16.mxu0 %v2041_v0 }
 0x10d   :  { %1901 = vmatpush3.bf16.msra.mxu1 %v2028_v46 }
 0x10e   :  { %1902 = vmatprep.subr.bf16.mxu1 %v2041_v0  ;;  %1917 = vmatpush3.bf16.msra.mxu0 %v2035_v53 }
 0x10f   :  { %1918 = vmatprep.subr.bf16.mxu0 %v2041_v0 }
 0x111   :  { %1903 = vmatpush3.bf16.msra.mxu1 %v2029_v47 }
 0x112   :  { %1904 = vmatprep.subr.bf16.mxu1 %v2041_v0  ;;  %1919 = vmatpush3.bf16.msra.mxu0 %v2036_v54 }
 0x113   :  { %1920 = vmatprep.subr.bf16.mxu0 %v2041_v0 }
 0x115   :  { %1905 = vmatpush3.bf16.msra.mxu1 %v2030_v48 }
 0x116   :  { %1906 = vmatprep.subr.bf16.mxu1 %v2041_v0  ;;  %1921 = vmatpush3.bf16.msra.mxu0 %v2037_v55 }
 0x117   :  { %1922 = vmatprep.subr.bf16.mxu0 %v2041_v0 }
 0x119   :  { %1907 = vmatpush3.bf16.msra.mxu1 %v2031_v49 }
 0x11a   :  { %1923 = vmatpush3.bf16.msra.mxu0 %v2038_v56 }
 0x11b   :  { %1924 = vmatprep.subr.bf16.mxu0 %v2041_v0 }
 0x11c   :  { %1909 = vmatmul.mubr.bf16.vlgmr.msra.gmra.mxu1 %v2032_v50 }
 0x11e   :  { %1925 = vmatpush3.bf16.msra.mxu0 %v2039_v57 }
 0x11f   :  { %1926 = vmatprep.subr.bf16.mxu0 %v2041_v0 }
 0x122   :  { %1927 = vmatpush3.bf16.msra.mxu0 %v2040_v58 }
 0x19c   :  { %v1730_v59 = vpop.f32.mrf.mxu1 }
 0x19e   :  { %v1731_v60 = vpop.f32.mrf.mxu1 }
 0x19f   :  { %v1732_v12 = vadd.f32 %v1731_v60, %v1730_v59 }
 0x1a0   :  { %v1733_v61 = vpop.f32.mrf.mxu1 }
 0x1a1   :  { %v1277_v15 = vadd.f32 %v1732_v12, %v1597_v13 }
 0x1a2   :  { %v1734_v63 = vpop.f32.mrf.mxu1 }
 0x1a4   :  { %v1752_v1 = vpop.f32.mrf.mxu0 }
 0x1a6   :  { %v1753_v2 = vpop.f32.mrf.mxu0 }
 0x1a7   :  { %v1754_v14 = vadd.f32 %v1753_v2, %v1752_v1 }
 0x1a8   :  { %v1755_v3 = vpop.f32.mrf.mxu0 }
 0x1a9   :  { %v1317_v17 = vadd.f32 %v1754_v14, %v1277_v15 }
 0x1aa   :  { %v1756_v4 = vpop.f32.mrf.mxu0 }
 0x1bc   :  { %v1774_v5 = vpop.f32.mrf.mxu1 }
 0x1be   :  { %v1775_v6 = vpop.f32.mrf.mxu1 }
 0x1bf   :  { %v1776_v16 = vadd.f32 %v1775_v6, %v1774_v5 }
 0x1c0   :  { %v1777_v7 = vpop.f32.mrf.mxu1 }
 0x1c1   :  { %v1357_v19 = vadd.f32 %v1776_v16, %v1317_v17 }
 0x1c2   :  { %v1778_v8 = vpop.f32.mrf.mxu1 }
 0x1c4   :  { %v1796_v9 = vpop.f32.mrf.mxu0 }
 0x1c6   :  { %v1797_v10 = vpop.f32.mrf.mxu0 }
 0x1c7   :  { %v1798_v18 = vadd.f32 %v1797_v10, %v1796_v9 }
 0x1c8   :  { %v1799_v0 = vpop.f32.mrf.mxu0 }
 0x1c9   :  { %v1397_v20 = vadd.f32 %v1798_v18, %v1357_v19 }
 0x1ca   :  { %v1800_v11 = vpop.f32.mrf.mxu0 }
 0x1dc   :  { %v1436_v21 = vpop.f32.mrf.mxu1 }
 0x1dd   :  { %v1437_v22 = vadd.f32 %v1436_v21, %v1397_v20 }
 0x1de   :  { %v1910_v23 = vpop.f32.mrf.mxu1 }
 0x1df   :  { %v1442_v24 = vmax.f32 %v1437_v22, 0.0 }
 0x1e0   :  { %v1439_v62 = vpop.f32.mrf.mxu1 }
 0x1e1   :  { %v1443_v25 = vpack.c.bf16 %v1442_v24, %v1442_v24 }
 0x1e2   :  { %v1911_v26 = vpop.f32.mrf.mxu1 }
 0x1e3   :  { %1929 = vmatmul.mubr.bf16.vlgmr.msra.gmra.mxu0 %v1443_v25 }
 0x2a3   :  { %v1543_v28 = vpop.f32.mrf.mxu0 }
 0x2a4   :  { %v1549_v29 = vadd.f32 %v1596_v27, %v1543_v28 }
 0x2a5   :  { %v1930_v30 = vpop.f32.mrf.mxu0 }
 0x2a6   :  { %1555 = vst [vmem:[%s2499_s7] sm:$0xff] %v1549_v29 }
 0x2a7   :  { %v1546_v31 = vpop.f32.mrf.mxu0 }
 0x2a9   :  { %v1931_v32 = vpop.f32.mrf.mxu0 }

</bundles_post_ra>
